<compile_context>
chip_gen: v7x
topology: tpu7x:2x2x1
jax: 0.10.0
libtpu: 0.0.40
codegen_flags: <defaults>
</compile_context>

<pallas_src>
import functools

import jax
import jax.numpy as jnp
from jax.experimental import pallas as pl
from jax.experimental.pallas import tpu as pltpu


def lstm_model_kernel(x_ref, feat_ref,
                      wih0_ref, whh0_ref, b0_ref,
                      w_l1_ref, b1_ref,
                      seqw_ref, seqb_ref,
                      featw_ref, featb_ref,
                      fcw_seq_ref, fcw_feat_ref, fcb_ref,
                      y_ref,
                      *, hidden, seq_len):
    H = hidden
    T = seq_len
    B = feat_ref.shape[0]

    # Gate columns are pre-permuted to (i, f, o, g): one sigmoid on a
    # contiguous (B, 3H) slice, one tanh on (B, H).
    def cell(gates, c_prev):
        sfo = jax.nn.sigmoid(gates[:, :3 * H])
        g = jnp.tanh(gates[:, 3 * H:])
        i = sfo[:, :H]
        f = sfo[:, H:2 * H]
        o = sfo[:, 2 * H:3 * H]
        c = f * c_prev + i * g
        h = o * jnp.tanh(c)
        return h, c

    # Independent of the recurrence; compute up front so it hides under the
    # serial LSTM chain.
    feat_out = (jnp.dot(feat_ref[...], featw_ref[...],
                        preferred_element_type=jnp.float32)
                + featb_ref[...])                                    # (B, H)

    # Layer-0 input contribution for all timesteps at once. input_size == 1,
    # so this is a broadcast multiply against the (1, 4H) input-weight row.
    x_tb = x_ref[...]                                                # (T, B) time-major
    wih0 = wih0_ref[...]                                             # (1, 4H)
    b0 = b0_ref[...]                                                 # (1, 4H)
    g0_in = x_tb[:, :, None] * wih0[None, :, :] + b0[None, :, :]     # (T, B, 4H)

    whh0 = whh0_ref[...]                                             # (H, 4H)
    w_l1 = w_l1_ref[...]                                             # (2H, 4H)  [wih1; whh1]
    b1 = b1_ref[...]                                                 # (1, 4H)

    zeros = jnp.zeros((B, H), jnp.float32)
    h1 = c1 = h2 = c2 = zeros

    # T is a small compile-time constant: fully unroll the recurrence.
    h2_steps = []
    for t in range(T):
        # Layer 0
        g0 = g0_in[t] + jnp.dot(h1, whh0, preferred_element_type=jnp.float32)
        h1, c1 = cell(g0, c1)
        # TODO(synk): inter-layer dropout (p=0.3) is training-only; inference forward omits it.
        # Layer 1: single fused matmul over the stacked [h1 | h2] input.
        hcat = jnp.concatenate([h1, h2], axis=1)                     # (B, 2H)
        g1 = jnp.dot(hcat, w_l1, preferred_element_type=jnp.float32) + b1
        h2, c2 = cell(g1, c2)
        h2_steps.append(h2)

    # out.reshape(B, T*H) in PyTorch == concat of per-step h2 along features.
    # One post-loop matmul replaces the per-step seq_tf accumulation, keeping
    # seqw entirely out of the recurrence.
    out_flat = jnp.concatenate(h2_steps, axis=1)                     # (B, T*H)
    seq_out = (jnp.dot(out_flat, seqw_ref[...],
                       preferred_element_type=jnp.float32)
               + seqb_ref[...])                                      # (B, H)

    # fc on concat([seq_out, feat_out]) as a split matmul (fcw pre-split).
    y = (jnp.dot(seq_out, fcw_seq_ref[...], preferred_element_type=jnp.float32)
         + jnp.dot(feat_out, fcw_feat_ref[...], preferred_element_type=jnp.float32)
         + fcb_ref[...])
    y_ref[...] = y.astype(y_ref.dtype)


def _permute_gate_cols(w, H):
    # PyTorch gate order (i, f, g, o) -> kernel order (i, f, o, g).
    return jnp.concatenate(
        [w[:, 0 * H:1 * H], w[:, 1 * H:2 * H], w[:, 3 * H:4 * H], w[:, 2 * H:3 * H]],
        axis=-1)


def lstm_model_forward(flow_feature, x, params, *, hidden, seq_len, num_classes):
    H = hidden
    B = x.shape[0]

    # Offline weight prep (outside the kernel):
    #  * permute gate columns to (i, f, o, g)
    #  * stack layer-1 input / hidden weights into one (2H, 4H) matrix
    #  * split the fc weight into its seq / feature halves
    #  * pass x time-major so per-step indexing is a leading-axis pick
    wih0 = _permute_gate_cols(params["wih0_t"], H)
    whh0 = _permute_gate_cols(params["whh0_t"], H)
    b0 = _permute_gate_cols(params["b0"], H)
    wih1 = _permute_gate_cols(params["wih1_t"], H)
    whh1 = _permute_gate_cols(params["whh1_t"], H)
    b1 = _permute_gate_cols(params["b1"], H)
    w_l1 = jnp.concatenate([wih1, whh1], axis=0)        # (2H, 4H)
    fcw_seq = params["fcw_t"][:H, :]                    # (H, C)
    fcw_feat = params["fcw_t"][H:, :]                   # (H, C)
    x_tb = x.T                                          # (T, B)

    args = (x_tb, flow_feature,
            wih0, whh0, b0,
            w_l1, b1,
            params["seqw_t"], params["seqb"],
            params["featw_t"], params["featb"],
            fcw_seq, fcw_feat, params["fcb"])

    # Footprint is ~100 KiB total: full-array blocks, single grid step.
    in_specs = [pl.BlockSpec(a.shape, (lambda i, nd=a.ndim: (0,) * nd))
                for a in args]
    out_specs = pl.BlockSpec((B, num_classes), lambda i: (0, 0))

    kernel = functools.partial(lstm_model_kernel, hidden=hidden, seq_len=seq_len)
    return pl.pallas_call(
        kernel,
        grid=(1,),
        in_specs=in_specs,
        out_specs=out_specs,
        out_shape=jax.ShapeDtypeStruct((B, num_classes), jnp.float32),
        compiler_params=pltpu.CompilerParams(
            dimension_semantics=("arbitrary",)),
    )(*args)


def lstm_model_ref(flow_feature, x, params, *, hidden, seq_len):
    """Pure-JAX reference of the same forward pass (original gate order)."""
    H = hidden
    B = x.shape[0]

    def cell(gates, c_prev):
        i = jax.nn.sigmoid(gates[:, 0 * H:1 * H])
        f = jax.nn.sigmoid(gates[:, 1 * H:2 * H])
        g = jnp.tanh(gates[:, 2 * H:3 * H])
        o = jax.nn.sigmoid(gates[:, 3 * H:4 * H])
        c = f * c_prev + i * g
        return o * jnp.tanh(c), c

    h1 = c1 = h2 = c2 = jnp.zeros((B, H), jnp.float32)
    outs = []
    for t in range(seq_len):
        x_t = x[:, t:t + 1]
        g0 = x_t * params["wih0_t"] + h1 @ params["whh0_t"] + params["b0"]
        h1, c1 = cell(g0, c1)
        g1 = h1 @ params["wih1_t"] + h2 @ params["whh1_t"] + params["b1"]
        h2, c2 = cell(g1, c2)
        outs.append(h2)
    out = jnp.concatenate(outs, axis=1)                 # (B, T*H)
    seq_out = out @ params["seqw_t"] + params["seqb"]
    feat_out = flow_feature @ params["featw_t"] + params["featb"]
    final = jnp.concatenate([seq_out, feat_out], axis=1)
    return final @ params["fcw_t"] + params["fcb"]


if __name__ == "__main__":
    B, T, H, F, C = 2, 8, 32, 39, 5   # batch, max_flow_length, rank, stat feats, classes

    key = jax.random.PRNGKey(0)
    ks = jax.random.split(key, 16)

    def init(k, shape, scale=0.1):
        return (scale * jax.random.normal(k, shape)).astype(jnp.float32)

    params = {
        "wih0_t": init(ks[0], (1, 4 * H)),       # LSTM layer0 W_ih^T (input_size=1)
        "whh0_t": init(ks[1], (H, 4 * H)),       # LSTM layer0 W_hh^T
        "b0":     init(ks[2], (1, 4 * H)),       # b_ih_l0 + b_hh_l0
        "wih1_t": init(ks[3], (H, 4 * H)),       # LSTM layer1 W_ih^T
        "whh1_t": init(ks[4], (H, 4 * H)),       # LSTM layer1 W_hh^T
        "b1":     init(ks[5], (1, 4 * H)),       # b_ih_l1 + b_hh_l1
        "seqw_t": init(ks[6], (T * H, H)),       # seq_tf weight^T
        "seqb":   init(ks[7], (1, H)),
        "featw_t": init(ks[8], (F, H)),          # feature_tf weight^T
        "featb":   init(ks[9], (1, H)),
        "fcw_t":  init(ks[10], (2 * H, C)),      # fc weight^T
        "fcb":    init(ks[11], (1, C)),
    }

    x = init(ks[12], (B, T), scale=1.0)          # flow sequence
    flow_feature = init(ks[13], (B, F), scale=1.0)

    y = lstm_model_forward(flow_feature, x, params,
                           hidden=H, seq_len=T, num_classes=C)
    y = jax.block_until_ready(y)

    y_ref = lstm_model_ref(flow_feature, x, params, hidden=H, seq_len=T)
    assert y.shape == (B, C)
    assert jnp.allclose(y, y_ref, rtol=1e-4, atol=1e-4), (y, y_ref)

    print("KERNEL_OK")
</pallas_src>

<mosaic_0001>
module attributes {stable_mosaic.version = 11 : i64} {
  func.func @lstm_model_kernel(%arg0: i32, %arg1: memref<8x2xf32, #tpu.memory_space<vmem>>, %arg2: memref<2x39xf32, #tpu.memory_space<vmem>>, %arg3: memref<1x128xf32, #tpu.memory_space<vmem>>, %arg4: memref<32x128xf32, #tpu.memory_space<vmem>>, %arg5: memref<1x128xf32, #tpu.memory_space<vmem>>, %arg6: memref<64x128xf32, #tpu.memory_space<vmem>>, %arg7: memref<1x128xf32, #tpu.memory_space<vmem>>, %arg8: memref<256x32xf32, #tpu.memory_space<vmem>>, %arg9: memref<1x32xf32, #tpu.memory_space<vmem>>, %arg10: memref<39x32xf32, #tpu.memory_space<vmem>>, %arg11: memref<1x32xf32, #tpu.memory_space<vmem>>, %arg12: memref<32x5xf32, #tpu.memory_space<vmem>>, %arg13: memref<32x5xf32, #tpu.memory_space<vmem>>, %arg14: memref<1x5xf32, #tpu.memory_space<vmem>>, %arg15: memref<2x5xf32, #tpu.memory_space<vmem>>) attributes {dimension_semantics = [#tpu.dimension_semantics<arbitrary>], iteration_bounds = array<i64: 1>, scalar_prefetch = 0 : i64, scratch_operands = 0 : i64, tpu.core_type = #tpu.core_type<tc>, window_params = [{pipeline_mode = #tpu.pipeline_mode<synchronous>, transform_indices = @transform_0, window_bounds = array<i64: 8, 2>}, {pipeline_mode = #tpu.pipeline_mode<synchronous>, transform_indices = @transform_1, window_bounds = array<i64: 2, 39>}, {pipeline_mode = #tpu.pipeline_mode<synchronous>, transform_indices = @transform_2, window_bounds = array<i64: 1, 128>}, {pipeline_mode = #tpu.pipeline_mode<synchronous>, transform_indices = @transform_3, window_bounds = array<i64: 32, 128>}, {pipeline_mode = #tpu.pipeline_mode<synchronous>, transform_indices = @transform_4, window_bounds = array<i64: 1, 128>}, {pipeline_mode = #tpu.pipeline_mode<synchronous>, transform_indices = @transform_5, window_bounds = array<i64: 64, 128>}, {pipeline_mode = #tpu.pipeline_mode<synchronous>, transform_indices = @transform_6, window_bounds = array<i64: 1, 128>}, {pipeline_mode = #tpu.pipeline_mode<synchronous>, transform_indices = @transform_7, window_bounds = array<i64: 256, 32>}, {pipeline_mode = #tpu.pipeline_mode<synchronous>, transform_indices = @transform_8, window_bounds = array<i64: 1, 32>}, {pipeline_mode = #tpu.pipeline_mode<synchronous>, transform_indices = @transform_9, window_bounds = array<i64: 39, 32>}, {pipeline_mode = #tpu.pipeline_mode<synchronous>, transform_indices = @transform_10, window_bounds = array<i64: 1, 32>}, {pipeline_mode = #tpu.pipeline_mode<synchronous>, transform_indices = @transform_11, window_bounds = array<i64: 32, 5>}, {pipeline_mode = #tpu.pipeline_mode<synchronous>, transform_indices = @transform_12, window_bounds = array<i64: 32, 5>}, {pipeline_mode = #tpu.pipeline_mode<synchronous>, transform_indices = @transform_13, window_bounds = array<i64: 1, 5>}, {pipeline_mode = #tpu.pipeline_mode<synchronous>, transform_indices = @transform_14, window_bounds = array<i64: 2, 5>}]} {
    %c0 = arith.constant 0 : index
    %c0_0 = arith.constant 0 : index
    %0 = vector.load %arg2[%c0, %c0_0] : memref<2x39xf32, #tpu.memory_space<vmem>>, vector<2x39xf32>
    %c0_1 = arith.constant 0 : index
    %c0_2 = arith.constant 0 : index
    %1 = vector.load %arg10[%c0_1, %c0_2] : memref<39x32xf32, #tpu.memory_space<vmem>>, vector<39x32xf32>
    %cst = arith.constant dense<0.000000e+00> : vector<2x32xf32>
    %2 = tpu.matmul %0, %1, %cst {dimension_numbers = #tpu.dot_dimension_numbers<[1], [0], [0], [1], [0, 0, 1, 1], [], []>} : vector<2x39xf32>, vector<39x32xf32>, vector<2x32xf32> -> vector<2x32xf32>
    %c0_3 = arith.constant 0 : index
    %c0_4 = arith.constant 0 : index
    %3 = vector.load %arg11[%c0_3, %c0_4] : memref<1x32xf32, #tpu.memory_space<vmem>>, vector<1x32xf32>
    %4 = vector.broadcast %3 : vector<1x32xf32> to vector<2x32xf32>
    %5 = arith.addf %2, %4 : vector<2x32xf32>
    %c0_5 = arith.constant 0 : index
    %c0_6 = arith.constant 0 : index
    %6 = vector.load %arg1[%c0_5, %c0_6] : memref<8x2xf32, #tpu.memory_space<vmem>>, vector<8x2xf32>
    %c0_7 = arith.constant 0 : index
    %c0_8 = arith.constant 0 : index
    %7 = vector.load %arg3[%c0_7, %c0_8] : memref<1x128xf32, #tpu.memory_space<vmem>>, vector<1x128xf32>
    %c0_9 = arith.constant 0 : index
    %c0_10 = arith.constant 0 : index
    %8 = vector.load %arg5[%c0_9, %c0_10] : memref<1x128xf32, #tpu.memory_space<vmem>>, vector<1x128xf32>
    %9 = vector.shape_cast %6 : vector<8x2xf32> to vector<8x2x1xf32>
    %10 = vector.shape_cast %7 : vector<1x128xf32> to vector<1x1x128xf32>
    %11 = vector.broadcast %9 : vector<8x2x1xf32> to vector<8x2x128xf32>
    %12 = vector.broadcast %10 : vector<1x1x128xf32> to vector<8x2x128xf32>
    %13 = arith.mulf %11, %12 : vector<8x2x128xf32>
    %14 = vector.shape_cast %8 : vector<1x128xf32> to vector<1x1x128xf32>
    %15 = vector.broadcast %14 : vector<1x1x128xf32> to vector<8x2x128xf32>
    %16 = arith.addf %13, %15 : vector<8x2x128xf32>
    %c0_11 = arith.constant 0 : index
    %c0_12 = arith.constant 0 : index
    %17 = vector.load %arg4[%c0_11, %c0_12] : memref<32x128xf32, #tpu.memory_space<vmem>>, vector<32x128xf32>
    %c0_13 = arith.constant 0 : index
    %c0_14 = arith.constant 0 : index
    %18 = vector.load %arg6[%c0_13, %c0_14] : memref<64x128xf32, #tpu.memory_space<vmem>>, vector<64x128xf32>
    %c0_15 = arith.constant 0 : index
    %c0_16 = arith.constant 0 : index
    %19 = vector.load %arg7[%c0_15, %c0_16] : memref<1x128xf32, #tpu.memory_space<vmem>>, vector<1x128xf32>
    %cst_17 = arith.constant 0.000000e+00 : f32
    %20 = vector.broadcast %cst_17 : f32 to vector<2x32xf32>
    %21 = vector.extract_strided_slice %16 {offsets = [0, 0, 0], sizes = [1, 2, 128], strides = [1, 1, 1]} : vector<8x2x128xf32> to vector<1x2x128xf32>
    %22 = vector.shape_cast %21 : vector<1x2x128xf32> to vector<2x128xf32>
    %cst_18 = arith.constant dense<0.000000e+00> : vector<2x128xf32>
    %23 = tpu.matmul %20, %17, %cst_18 {dimension_numbers = #tpu.dot_dimension_numbers<[1], [0], [0], [1], [0, 0, 1, 1], [], []>} : vector<2x32xf32>, vector<32x128xf32>, vector<2x128xf32> -> vector<2x128xf32>
    %24 = arith.addf %22, %23 : vector<2x128xf32>
    %25 = vector.extract_strided_slice %24 {offsets = [0, 0], sizes = [2, 96], strides = [1, 1]} : vector<2x128xf32> to vector<2x96xf32>
    %26 = arith.negf %25 : vector<2x96xf32>
    %27 = math.exp %26 : vector<2x96xf32>
    %cst_19 = arith.constant 1.000000e+00 : f32
    %28 = vector.broadcast %cst_19 : f32 to vector<2x96xf32>
    %29 = arith.addf %28, %27 : vector<2x96xf32>
    %30 = arith.divf %28, %29 : vector<2x96xf32>
    %31 = vector.extract_strided_slice %24 {offsets = [0, 96], sizes = [2, 32], strides = [1, 1]} : vector<2x128xf32> to vector<2x32xf32>
    %32 = math.tanh %31 : vector<2x32xf32>
    %33 = vector.extract_strided_slice %30 {offsets = [0, 0], sizes = [2, 32], strides = [1, 1]} : vector<2x96xf32> to vector<2x32xf32>
    %34 = vector.extract_strided_slice %30 {offsets = [0, 32], sizes = [2, 32], strides = [1, 1]} : vector<2x96xf32> to vector<2x32xf32>
    %35 = vector.extract_strided_slice %30 {offsets = [0, 64], sizes = [2, 32], strides = [1, 1]} : vector<2x96xf32> to vector<2x32xf32>
    %36 = arith.mulf %34, %20 : vector<2x32xf32>
    %37 = arith.mulf %33, %32 : vector<2x32xf32>
    %38 = arith.addf %36, %37 : vector<2x32xf32>
    %39 = math.tanh %38 : vector<2x32xf32>
    %40 = arith.mulf %35, %39 : vector<2x32xf32>
    %41 = tpu.concatenate %40, %20 in 1 : vector<2x32xf32>, vector<2x32xf32> -> vector<2x64xf32>
    %cst_20 = arith.constant dense<0.000000e+00> : vector<2x128xf32>
    %42 = tpu.matmul %41, %18, %cst_20 {dimension_numbers = #tpu.dot_dimension_numbers<[1], [0], [0], [1], [0, 0, 1, 1], [], []>} : vector<2x64xf32>, vector<64x128xf32>, vector<2x128xf32> -> vector<2x128xf32>
    %43 = vector.broadcast %19 : vector<1x128xf32> to vector<2x128xf32>
    %44 = arith.addf %42, %43 : vector<2x128xf32>
    %45 = vector.extract_strided_slice %44 {offsets = [0, 0], sizes = [2, 96], strides = [1, 1]} : vector<2x128xf32> to vector<2x96xf32>
    %46 = arith.negf %45 : vector<2x96xf32>
    %47 = math.exp %46 : vector<2x96xf32>
    %cst_21 = arith.constant 1.000000e+00 : f32
    %48 = vector.broadcast %cst_21 : f32 to vector<2x96xf32>
    %49 = arith.addf %48, %47 : vector<2x96xf32>
    %50 = arith.divf %48, %49 : vector<2x96xf32>
    %51 = vector.extract_strided_slice %44 {offsets = [0, 96], sizes = [2, 32], strides = [1, 1]} : vector<2x128xf32> to vector<2x32xf32>
    %52 = math.tanh %51 : vector<2x32xf32>
    %53 = vector.extract_strided_slice %50 {offsets = [0, 0], sizes = [2, 32], strides = [1, 1]} : vector<2x96xf32> to vector<2x32xf32>
    %54 = vector.extract_strided_slice %50 {offsets = [0, 32], sizes = [2, 32], strides = [1, 1]} : vector<2x96xf32> to vector<2x32xf32>
    %55 = vector.extract_strided_slice %50 {offsets = [0, 64], sizes = [2, 32], strides = [1, 1]} : vector<2x96xf32> to vector<2x32xf32>
    %56 = arith.mulf %54, %20 : vector<2x32xf32>
    %57 = arith.mulf %53, %52 : vector<2x32xf32>
    %58 = arith.addf %56, %57 : vector<2x32xf32>
    %59 = math.tanh %58 : vector<2x32xf32>
    %60 = arith.mulf %55, %59 : vector<2x32xf32>
    %61 = vector.extract_strided_slice %16 {offsets = [1, 0, 0], sizes = [1, 2, 128], strides = [1, 1, 1]} : vector<8x2x128xf32> to vector<1x2x128xf32>
    %62 = vector.shape_cast %61 : vector<1x2x128xf32> to vector<2x128xf32>
    %cst_22 = arith.constant dense<0.000000e+00> : vector<2x128xf32>
    %63 = tpu.matmul %40, %17, %cst_22 {dimension_numbers = #tpu.dot_dimension_numbers<[1], [0], [0], [1], [0, 0, 1, 1], [], []>} : vector<2x32xf32>, vector<32x128xf32>, vector<2x128xf32> -> vector<2x128xf32>
    %64 = arith.addf %62, %63 : vector<2x128xf32>
    %65 = vector.extract_strided_slice %64 {offsets = [0, 0], sizes = [2, 96], strides = [1, 1]} : vector<2x128xf32> to vector<2x96xf32>
    %66 = arith.negf %65 : vector<2x96xf32>
    %67 = math.exp %66 : vector<2x96xf32>
    %cst_23 = arith.constant 1.000000e+00 : f32
    %68 = vector.broadcast %cst_23 : f32 to vector<2x96xf32>
    %69 = arith.addf %68, %67 : vector<2x96xf32>
    %70 = arith.divf %68, %69 : vector<2x96xf32>
    %71 = vector.extract_strided_slice %64 {offsets = [0, 96], sizes = [2, 32], strides = [1, 1]} : vector<2x128xf32> to vector<2x32xf32>
    %72 = math.tanh %71 : vector<2x32xf32>
    %73 = vector.extract_strided_slice %70 {offsets = [0, 0], sizes = [2, 32], strides = [1, 1]} : vector<2x96xf32> to vector<2x32xf32>
    %74 = vector.extract_strided_slice %70 {offsets = [0, 32], sizes = [2, 32], strides = [1, 1]} : vector<2x96xf32> to vector<2x32xf32>
    %75 = vector.extract_strided_slice %70 {offsets = [0, 64], sizes = [2, 32], strides = [1, 1]} : vector<2x96xf32> to vector<2x32xf32>
    %76 = arith.mulf %74, %38 : vector<2x32xf32>
    %77 = arith.mulf %73, %72 : vector<2x32xf32>
    %78 = arith.addf %76, %77 : vector<2x32xf32>
    %79 = math.tanh %78 : vector<2x32xf32>
    %80 = arith.mulf %75, %79 : vector<2x32xf32>
    %81 = tpu.concatenate %80, %60 in 1 : vector<2x32xf32>, vector<2x32xf32> -> vector<2x64xf32>
    %cst_24 = arith.constant dense<0.000000e+00> : vector<2x128xf32>
    %82 = tpu.matmul %81, %18, %cst_24 {dimension_numbers = #tpu.dot_dimension_numbers<[1], [0], [0], [1], [0, 0, 1, 1], [], []>} : vector<2x64xf32>, vector<64x128xf32>, vector<2x128xf32> -> vector<2x128xf32>
    %83 = vector.broadcast %19 : vector<1x128xf32> to vector<2x128xf32>
    %84 = arith.addf %82, %83 : vector<2x128xf32>
    %85 = vector.extract_strided_slice %84 {offsets = [0, 0], sizes = [2, 96], strides = [1, 1]} : vector<2x128xf32> to vector<2x96xf32>
    %86 = arith.negf %85 : vector<2x96xf32>
    %87 = math.exp %86 : vector<2x96xf32>
    %cst_25 = arith.constant 1.000000e+00 : f32
    %88 = vector.broadcast %cst_25 : f32 to vector<2x96xf32>
    %89 = arith.addf %88, %87 : vector<2x96xf32>
    %90 = arith.divf %88, %89 : vector<2x96xf32>
    %91 = vector.extract_strided_slice %84 {offsets = [0, 96], sizes = [2, 32], strides = [1, 1]} : vector<2x128xf32> to vector<2x32xf32>
    %92 = math.tanh %91 : vector<2x32xf32>
    %93 = vector.extract_strided_slice %90 {offsets = [0, 0], sizes = [2, 32], strides = [1, 1]} : vector<2x96xf32> to vector<2x32xf32>
    %94 = vector.extract_strided_slice %90 {offsets = [0, 32], sizes = [2, 32], strides = [1, 1]} : vector<2x96xf32> to vector<2x32xf32>
    %95 = vector.extract_strided_slice %90 {offsets = [0, 64], sizes = [2, 32], strides = [1, 1]} : vector<2x96xf32> to vector<2x32xf32>
    %96 = arith.mulf %94, %58 : vector<2x32xf32>
    %97 = arith.mulf %93, %92 : vector<2x32xf32>
    %98 = arith.addf %96, %97 : vector<2x32xf32>
    %99 = math.tanh %98 : vector<2x32xf32>
    %100 = arith.mulf %95, %99 : vector<2x32xf32>
    %101 = vector.extract_strided_slice %16 {offsets = [2, 0, 0], sizes = [1, 2, 128], strides = [1, 1, 1]} : vector<8x2x128xf32> to vector<1x2x128xf32>
    %102 = vector.shape_cast %101 : vector<1x2x128xf32> to vector<2x128xf32>
    %cst_26 = arith.constant dense<0.000000e+00> : vector<2x128xf32>
    %103 = tpu.matmul %80, %17, %cst_26 {dimension_numbers = #tpu.dot_dimension_numbers<[1], [0], [0], [1], [0, 0, 1, 1], [], []>} : vector<2x32xf32>, vector<32x128xf32>, vector<2x128xf32> -> vector<2x128xf32>
    %104 = arith.addf %102, %103 : vector<2x128xf32>
    %105 = vector.extract_strided_slice %104 {offsets = [0, 0], sizes = [2, 96], strides = [1, 1]} : vector<2x128xf32> to vector<2x96xf32>
    %106 = arith.negf %105 : vector<2x96xf32>
    %107 = math.exp %106 : vector<2x96xf32>
    %cst_27 = arith.constant 1.000000e+00 : f32
    %108 = vector.broadcast %cst_27 : f32 to vector<2x96xf32>
    %109 = arith.addf %108, %107 : vector<2x96xf32>
    %110 = arith.divf %108, %109 : vector<2x96xf32>
    %111 = vector.extract_strided_slice %104 {offsets = [0, 96], sizes = [2, 32], strides = [1, 1]} : vector<2x128xf32> to vector<2x32xf32>
    %112 = math.tanh %111 : vector<2x32xf32>
    %113 = vector.extract_strided_slice %110 {offsets = [0, 0], sizes = [2, 32], strides = [1, 1]} : vector<2x96xf32> to vector<2x32xf32>
    %114 = vector.extract_strided_slice %110 {offsets = [0, 32], sizes = [2, 32], strides = [1, 1]} : vector<2x96xf32> to vector<2x32xf32>
    %115 = vector.extract_strided_slice %110 {offsets = [0, 64], sizes = [2, 32], strides = [1, 1]} : vector<2x96xf32> to vector<2x32xf32>
    %116 = arith.mulf %114, %78 : vector<2x32xf32>
    %117 = arith.mulf %113, %112 : vector<2x32xf32>
    %118 = arith.addf %116, %117 : vector<2x32xf32>
    %119 = math.tanh %118 : vector<2x32xf32>
    %120 = arith.mulf %115, %119 : vector<2x32xf32>
    %121 = tpu.concatenate %120, %100 in 1 : vector<2x32xf32>, vector<2x32xf32> -> vector<2x64xf32>
    %cst_28 = arith.constant dense<0.000000e+00> : vector<2x128xf32>
    %122 = tpu.matmul %121, %18, %cst_28 {dimension_numbers = #tpu.dot_dimension_numbers<[1], [0], [0], [1], [0, 0, 1, 1], [], []>} : vector<2x64xf32>, vector<64x128xf32>, vector<2x128xf32> -> vector<2x128xf32>
    %123 = vector.broadcast %19 : vector<1x128xf32> to vector<2x128xf32>
    %124 = arith.addf %122, %123 : vector<2x128xf32>
    %125 = vector.extract_strided_slice %124 {offsets = [0, 0], sizes = [2, 96], strides = [1, 1]} : vector<2x128xf32> to vector<2x96xf32>
    %126 = arith.negf %125 : vector<2x96xf32>
    %127 = math.exp %126 : vector<2x96xf32>
    %cst_29 = arith.constant 1.000000e+00 : f32
    %128 = vector.broadcast %cst_29 : f32 to vector<2x96xf32>
    %129 = arith.addf %128, %127 : vector<2x96xf32>
    %130 = arith.divf %128, %129 : vector<2x96xf32>
    %131 = vector.extract_strided_slice %124 {offsets = [0, 96], sizes = [2, 32], strides = [1, 1]} : vector<2x128xf32> to vector<2x32xf32>
    %132 = math.tanh %131 : vector<2x32xf32>
    %133 = vector.extract_strided_slice %130 {offsets = [0, 0], sizes = [2, 32], strides = [1, 1]} : vector<2x96xf32> to vector<2x32xf32>
    %134 = vector.extract_strided_slice %130 {offsets = [0, 32], sizes = [2, 32], strides = [1, 1]} : vector<2x96xf32> to vector<2x32xf32>
    %135 = vector.extract_strided_slice %130 {offsets = [0, 64], sizes = [2, 32], strides = [1, 1]} : vector<2x96xf32> to vector<2x32xf32>
    %136 = arith.mulf %134, %98 : vector<2x32xf32>
    %137 = arith.mulf %133, %132 : vector<2x32xf32>
    %138 = arith.addf %136, %137 : vector<2x32xf32>
    %139 = math.tanh %138 : vector<2x32xf32>
    %140 = arith.mulf %135, %139 : vector<2x32xf32>
    %141 = vector.extract_strided_slice %16 {offsets = [3, 0, 0], sizes = [1, 2, 128], strides = [1, 1, 1]} : vector<8x2x128xf32> to vector<1x2x128xf32>
    %142 = vector.shape_cast %141 : vector<1x2x128xf32> to vector<2x128xf32>
    %cst_30 = arith.constant dense<0.000000e+00> : vector<2x128xf32>
    %143 = tpu.matmul %120, %17, %cst_30 {dimension_numbers = #tpu.dot_dimension_numbers<[1], [0], [0], [1], [0, 0, 1, 1], [], []>} : vector<2x32xf32>, vector<32x128xf32>, vector<2x128xf32> -> vector<2x128xf32>
    %144 = arith.addf %142, %143 : vector<2x128xf32>
    %145 = vector.extract_strided_slice %144 {offsets = [0, 0], sizes = [2, 96], strides = [1, 1]} : vector<2x128xf32> to vector<2x96xf32>
    %146 = arith.negf %145 : vector<2x96xf32>
    %147 = math.exp %146 : vector<2x96xf32>
    %cst_31 = arith.constant 1.000000e+00 : f32
    %148 = vector.broadcast %cst_31 : f32 to vector<2x96xf32>
    %149 = arith.addf %148, %147 : vector<2x96xf32>
    %150 = arith.divf %148, %149 : vector<2x96xf32>
    %151 = vector.extract_strided_slice %144 {offsets = [0, 96], sizes = [2, 32], strides = [1, 1]} : vector<2x128xf32> to vector<2x32xf32>
    %152 = math.tanh %151 : vector<2x32xf32>
    %153 = vector.extract_strided_slice %150 {offsets = [0, 0], sizes = [2, 32], strides = [1, 1]} : vector<2x96xf32> to vector<2x32xf32>
    %154 = vector.extract_strided_slice %150 {offsets = [0, 32], sizes = [2, 32], strides = [1, 1]} : vector<2x96xf32> to vector<2x32xf32>
    %155 = vector.extract_strided_slice %150 {offsets = [0, 64], sizes = [2, 32], strides = [1, 1]} : vector<2x96xf32> to vector<2x32xf32>
    %156 = arith.mulf %154, %118 : vector<2x32xf32>
    %157 = arith.mulf %153, %152 : vector<2x32xf32>
    %158 = arith.addf %156, %157 : vector<2x32xf32>
    %159 = math.tanh %158 : vector<2x32xf32>
    %160 = arith.mulf %155, %159 : vector<2x32xf32>
    %161 = tpu.concatenate %160, %140 in 1 : vector<2x32xf32>, vector<2x32xf32> -> vector<2x64xf32>
    %cst_32 = arith.constant dense<0.000000e+00> : vector<2x128xf32>
    %162 = tpu.matmul %161, %18, %cst_32 {dimension_numbers = #tpu.dot_dimension_numbers<[1], [0], [0], [1], [0, 0, 1, 1], [], []>} : vector<2x64xf32>, vector<64x128xf32>, vector<2x128xf32> -> vector<2x128xf32>
    %163 = vector.broadcast %19 : vector<1x128xf32> to vector<2x128xf32>
    %164 = arith.addf %162, %163 : vector<2x128xf32>
    %165 = vector.extract_strided_slice %164 {offsets = [0, 0], sizes = [2, 96], strides = [1, 1]} : vector<2x128xf32> to vector<2x96xf32>
    %166 = arith.negf %165 : vector<2x96xf32>
    %167 = math.exp %166 : vector<2x96xf32>
    %cst_33 = arith.constant 1.000000e+00 : f32
    %168 = vector.broadcast %cst_33 : f32 to vector<2x96xf32>
    %169 = arith.addf %168, %167 : vector<2x96xf32>
    %170 = arith.divf %168, %169 : vector<2x96xf32>
    %171 = vector.extract_strided_slice %164 {offsets = [0, 96], sizes = [2, 32], strides = [1, 1]} : vector<2x128xf32> to vector<2x32xf32>
    %172 = math.tanh %171 : vector<2x32xf32>
    %173 = vector.extract_strided_slice %170 {offsets = [0, 0], sizes = [2, 32], strides = [1, 1]} : vector<2x96xf32> to vector<2x32xf32>
    %174 = vector.extract_strided_slice %170 {offsets = [0, 32], sizes = [2, 32], strides = [1, 1]} : vector<2x96xf32> to vector<2x32xf32>
    %175 = vector.extract_strided_slice %170 {offsets = [0, 64], sizes = [2, 32], strides = [1, 1]} : vector<2x96xf32> to vector<2x32xf32>
    %176 = arith.mulf %174, %138 : vector<2x32xf32>
    %177 = arith.mulf %173, %172 : vector<2x32xf32>
    %178 = arith.addf %176, %177 : vector<2x32xf32>
    %179 = math.tanh %178 : vector<2x32xf32>
    %180 = arith.mulf %175, %179 : vector<2x32xf32>
    %181 = vector.extract_strided_slice %16 {offsets = [4, 0, 0], sizes = [1, 2, 128], strides = [1, 1, 1]} : vector<8x2x128xf32> to vector<1x2x128xf32>
    %182 = vector.shape_cast %181 : vector<1x2x128xf32> to vector<2x128xf32>
    %cst_34 = arith.constant dense<0.000000e+00> : vector<2x128xf32>
    %183 = tpu.matmul %160, %17, %cst_34 {dimension_numbers = #tpu.dot_dimension_numbers<[1], [0], [0], [1], [0, 0, 1, 1], [], []>} : vector<2x32xf32>, vector<32x128xf32>, vector<2x128xf32> -> vector<2x128xf32>
    %184 = arith.addf %182, %183 : vector<2x128xf32>
    %185 = vector.extract_strided_slice %184 {offsets = [0, 0], sizes = [2, 96], strides = [1, 1]} : vector<2x128xf32> to vector<2x96xf32>
    %186 = arith.negf %185 : vector<2x96xf32>
    %187 = math.exp %186 : vector<2x96xf32>
    %cst_35 = arith.constant 1.000000e+00 : f32
    %188 = vector.broadcast %cst_35 : f32 to vector<2x96xf32>
    %189 = arith.addf %188, %187 : vector<2x96xf32>
    %190 = arith.divf %188, %189 : vector<2x96xf32>
    %191 = vector.extract_strided_slice %184 {offsets = [0, 96], sizes = [2, 32], strides = [1, 1]} : vector<2x128xf32> to vector<2x32xf32>
    %192 = math.tanh %191 : vector<2x32xf32>
    %193 = vector.extract_strided_slice %190 {offsets = [0, 0], sizes = [2, 32], strides = [1, 1]} : vector<2x96xf32> to vector<2x32xf32>
    %194 = vector.extract_strided_slice %190 {offsets = [0, 32], sizes = [2, 32], strides = [1, 1]} : vector<2x96xf32> to vector<2x32xf32>
    %195 = vector.extract_strided_slice %190 {offsets = [0, 64], sizes = [2, 32], strides = [1, 1]} : vector<2x96xf32> to vector<2x32xf32>
    %196 = arith.mulf %194, %158 : vector<2x32xf32>
    %197 = arith.mulf %193, %192 : vector<2x32xf32>
    %198 = arith.addf %196, %197 : vector<2x32xf32>
    %199 = math.tanh %198 : vector<2x32xf32>
    %200 = arith.mulf %195, %199 : vector<2x32xf32>
    %201 = tpu.concatenate %200, %180 in 1 : vector<2x32xf32>, vector<2x32xf32> -> vector<2x64xf32>
    %cst_36 = arith.constant dense<0.000000e+00> : vector<2x128xf32>
    %202 = tpu.matmul %201, %18, %cst_36 {dimension_numbers = #tpu.dot_dimension_numbers<[1], [0], [0], [1], [0, 0, 1, 1], [], []>} : vector<2x64xf32>, vector<64x128xf32>, vector<2x128xf32> -> vector<2x128xf32>
    %203 = vector.broadcast %19 : vector<1x128xf32> to vector<2x128xf32>
    %204 = arith.addf %202, %203 : vector<2x128xf32>
    %205 = vector.extract_strided_slice %204 {offsets = [0, 0], sizes = [2, 96], strides = [1, 1]} : vector<2x128xf32> to vector<2x96xf32>
    %206 = arith.negf %205 : vector<2x96xf32>
    %207 = math.exp %206 : vector<2x96xf32>
    %cst_37 = arith.constant 1.000000e+00 : f32
    %208 = vector.broadcast %cst_37 : f32 to vector<2x96xf32>
    %209 = arith.addf %208, %207 : vector<2x96xf32>
    %210 = arith.divf %208, %209 : vector<2x96xf32>
    %211 = vector.extract_strided_slice %204 {offsets = [0, 96], sizes = [2, 32], strides = [1, 1]} : vector<2x128xf32> to vector<2x32xf32>
    %212 = math.tanh %211 : vector<2x32xf32>
    %213 = vector.extract_strided_slice %210 {offsets = [0, 0], sizes = [2, 32], strides = [1, 1]} : vector<2x96xf32> to vector<2x32xf32>
    %214 = vector.extract_strided_slice %210 {offsets = [0, 32], sizes = [2, 32], strides = [1, 1]} : vector<2x96xf32> to vector<2x32xf32>
    %215 = vector.extract_strided_slice %210 {offsets = [0, 64], sizes = [2, 32], strides = [1, 1]} : vector<2x96xf32> to vector<2x32xf32>
    %216 = arith.mulf %214, %178 : vector<2x32xf32>
    %217 = arith.mulf %213, %212 : vector<2x32xf32>
    %218 = arith.addf %216, %217 : vector<2x32xf32>
    %219 = math.tanh %218 : vector<2x32xf32>
    %220 = arith.mulf %215, %219 : vector<2x32xf32>
    %221 = vector.extract_strided_slice %16 {offsets = [5, 0, 0], sizes = [1, 2, 128], strides = [1, 1, 1]} : vector<8x2x128xf32> to vector<1x2x128xf32>
    %222 = vector.shape_cast %221 : vector<1x2x128xf32> to vector<2x128xf32>
    %cst_38 = arith.constant dense<0.000000e+00> : vector<2x128xf32>
    %223 = tpu.matmul %200, %17, %cst_38 {dimension_numbers = #tpu.dot_dimension_numbers<[1], [0], [0], [1], [0, 0, 1, 1], [], []>} : vector<2x32xf32>, vector<32x128xf32>, vector<2x128xf32> -> vector<2x128xf32>
    %224 = arith.addf %222, %223 : vector<2x128xf32>
    %225 = vector.extract_strided_slice %224 {offsets = [0, 0], sizes = [2, 96], strides = [1, 1]} : vector<2x128xf32> to vector<2x96xf32>
    %226 = arith.negf %225 : vector<2x96xf32>
    %227 = math.exp %226 : vector<2x96xf32>
    %cst_39 = arith.constant 1.000000e+00 : f32
    %228 = vector.broadcast %cst_39 : f32 to vector<2x96xf32>
    %229 = arith.addf %228, %227 : vector<2x96xf32>
    %230 = arith.divf %228, %229 : vector<2x96xf32>
    %231 = vector.extract_strided_slice %224 {offsets = [0, 96], sizes = [2, 32], strides = [1, 1]} : vector<2x128xf32> to vector<2x32xf32>
    %232 = math.tanh %231 : vector<2x32xf32>
    %233 = vector.extract_strided_slice %230 {offsets = [0, 0], sizes = [2, 32], strides = [1, 1]} : vector<2x96xf32> to vector<2x32xf32>
    %234 = vector.extract_strided_slice %230 {offsets = [0, 32], sizes = [2, 32], strides = [1, 1]} : vector<2x96xf32> to vector<2x32xf32>
    %235 = vector.extract_strided_slice %230 {offsets = [0, 64], sizes = [2, 32], strides = [1, 1]} : vector<2x96xf32> to vector<2x32xf32>
    %236 = arith.mulf %234, %198 : vector<2x32xf32>
    %237 = arith.mulf %233, %232 : vector<2x32xf32>
    %238 = arith.addf %236, %237 : vector<2x32xf32>
    %239 = math.tanh %238 : vector<2x32xf32>
    %240 = arith.mulf %235, %239 : vector<2x32xf32>
    %241 = tpu.concatenate %240, %220 in 1 : vector<2x32xf32>, vector<2x32xf32> -> vector<2x64xf32>
    %cst_40 = arith.constant dense<0.000000e+00> : vector<2x128xf32>
    %242 = tpu.matmul %241, %18, %cst_40 {dimension_numbers = #tpu.dot_dimension_numbers<[1], [0], [0], [1], [0, 0, 1, 1], [], []>} : vector<2x64xf32>, vector<64x128xf32>, vector<2x128xf32> -> vector<2x128xf32>
    %243 = vector.broadcast %19 : vector<1x128xf32> to vector<2x128xf32>
    %244 = arith.addf %242, %243 : vector<2x128xf32>
    %245 = vector.extract_strided_slice %244 {offsets = [0, 0], sizes = [2, 96], strides = [1, 1]} : vector<2x128xf32> to vector<2x96xf32>
    %246 = arith.negf %245 : vector<2x96xf32>
    %247 = math.exp %246 : vector<2x96xf32>
    %cst_41 = arith.constant 1.000000e+00 : f32
    %248 = vector.broadcast %cst_41 : f32 to vector<2x96xf32>
    %249 = arith.addf %248, %247 : vector<2x96xf32>
    %250 = arith.divf %248, %249 : vector<2x96xf32>
    %251 = vector.extract_strided_slice %244 {offsets = [0, 96], sizes = [2, 32], strides = [1, 1]} : vector<2x128xf32> to vector<2x32xf32>
    %252 = math.tanh %251 : vector<2x32xf32>
    %253 = vector.extract_strided_slice %250 {offsets = [0, 0], sizes = [2, 32], strides = [1, 1]} : vector<2x96xf32> to vector<2x32xf32>
    %254 = vector.extract_strided_slice %250 {offsets = [0, 32], sizes = [2, 32], strides = [1, 1]} : vector<2x96xf32> to vector<2x32xf32>
    %255 = vector.extract_strided_slice %250 {offsets = [0, 64], sizes = [2, 32], strides = [1, 1]} : vector<2x96xf32> to vector<2x32xf32>
    %256 = arith.mulf %254, %218 : vector<2x32xf32>
    %257 = arith.mulf %253, %252 : vector<2x32xf32>
    %258 = arith.addf %256, %257 : vector<2x32xf32>
    %259 = math.tanh %258 : vector<2x32xf32>
    %260 = arith.mulf %255, %259 : vector<2x32xf32>
    %261 = vector.extract_strided_slice %16 {offsets = [6, 0, 0], sizes = [1, 2, 128], strides = [1, 1, 1]} : vector<8x2x128xf32> to vector<1x2x128xf32>
    %262 = vector.shape_cast %261 : vector<1x2x128xf32> to vector<2x128xf32>
    %cst_42 = arith.constant dense<0.000000e+00> : vector<2x128xf32>
    %263 = tpu.matmul %240, %17, %cst_42 {dimension_numbers = #tpu.dot_dimension_numbers<[1], [0], [0], [1], [0, 0, 1, 1], [], []>} : vector<2x32xf32>, vector<32x128xf32>, vector<2x128xf32> -> vector<2x128xf32>
    %264 = arith.addf %262, %263 : vector<2x128xf32>
    %265 = vector.extract_strided_slice %264 {offsets = [0, 0], sizes = [2, 96], strides = [1, 1]} : vector<2x128xf32> to vector<2x96xf32>
    %266 = arith.negf %265 : vector<2x96xf32>
    %267 = math.exp %266 : vector<2x96xf32>
    %cst_43 = arith.constant 1.000000e+00 : f32
    %268 = vector.broadcast %cst_43 : f32 to vector<2x96xf32>
    %269 = arith.addf %268, %267 : vector<2x96xf32>
    %270 = arith.divf %268, %269 : vector<2x96xf32>
    %271 = vector.extract_strided_slice %264 {offsets = [0, 96], sizes = [2, 32], strides = [1, 1]} : vector<2x128xf32> to vector<2x32xf32>
    %272 = math.tanh %271 : vector<2x32xf32>
    %273 = vector.extract_strided_slice %270 {offsets = [0, 0], sizes = [2, 32], strides = [1, 1]} : vector<2x96xf32> to vector<2x32xf32>
    %274 = vector.extract_strided_slice %270 {offsets = [0, 32], sizes = [2, 32], strides = [1, 1]} : vector<2x96xf32> to vector<2x32xf32>
    %275 = vector.extract_strided_slice %270 {offsets = [0, 64], sizes = [2, 32], strides = [1, 1]} : vector<2x96xf32> to vector<2x32xf32>
    %276 = arith.mulf %274, %238 : vector<2x32xf32>
    %277 = arith.mulf %273, %272 : vector<2x32xf32>
    %278 = arith.addf %276, %277 : vector<2x32xf32>
    %279 = math.tanh %278 : vector<2x32xf32>
    %280 = arith.mulf %275, %279 : vector<2x32xf32>
    %281 = tpu.concatenate %280, %260 in 1 : vector<2x32xf32>, vector<2x32xf32> -> vector<2x64xf32>
    %cst_44 = arith.constant dense<0.000000e+00> : vector<2x128xf32>
    %282 = tpu.matmul %281, %18, %cst_44 {dimension_numbers = #tpu.dot_dimension_numbers<[1], [0], [0], [1], [0, 0, 1, 1], [], []>} : vector<2x64xf32>, vector<64x128xf32>, vector<2x128xf32> -> vector<2x128xf32>
    %283 = vector.broadcast %19 : vector<1x128xf32> to vector<2x128xf32>
    %284 = arith.addf %282, %283 : vector<2x128xf32>
    %285 = vector.extract_strided_slice %284 {offsets = [0, 0], sizes = [2, 96], strides = [1, 1]} : vector<2x128xf32> to vector<2x96xf32>
    %286 = arith.negf %285 : vector<2x96xf32>
    %287 = math.exp %286 : vector<2x96xf32>
    %cst_45 = arith.constant 1.000000e+00 : f32
    %288 = vector.broadcast %cst_45 : f32 to vector<2x96xf32>
    %289 = arith.addf %288, %287 : vector<2x96xf32>
    %290 = arith.divf %288, %289 : vector<2x96xf32>
    %291 = vector.extract_strided_slice %284 {offsets = [0, 96], sizes = [2, 32], strides = [1, 1]} : vector<2x128xf32> to vector<2x32xf32>
    %292 = math.tanh %291 : vector<2x32xf32>
    %293 = vector.extract_strided_slice %290 {offsets = [0, 0], sizes = [2, 32], strides = [1, 1]} : vector<2x96xf32> to vector<2x32xf32>
    %294 = vector.extract_strided_slice %290 {offsets = [0, 32], sizes = [2, 32], strides = [1, 1]} : vector<2x96xf32> to vector<2x32xf32>
    %295 = vector.extract_strided_slice %290 {offsets = [0, 64], sizes = [2, 32], strides = [1, 1]} : vector<2x96xf32> to vector<2x32xf32>
    %296 = arith.mulf %294, %258 : vector<2x32xf32>
    %297 = arith.mulf %293, %292 : vector<2x32xf32>
    %298 = arith.addf %296, %297 : vector<2x32xf32>
    %299 = math.tanh %298 : vector<2x32xf32>
    %300 = arith.mulf %295, %299 : vector<2x32xf32>
    %301 = vector.extract_strided_slice %16 {offsets = [7, 0, 0], sizes = [1, 2, 128], strides = [1, 1, 1]} : vector<8x2x128xf32> to vector<1x2x128xf32>
    %302 = vector.shape_cast %301 : vector<1x2x128xf32> to vector<2x128xf32>
    %cst_46 = arith.constant dense<0.000000e+00> : vector<2x128xf32>
    %303 = tpu.matmul %280, %17, %cst_46 {dimension_numbers = #tpu.dot_dimension_numbers<[1], [0], [0], [1], [0, 0, 1, 1], [], []>} : vector<2x32xf32>, vector<32x128xf32>, vector<2x128xf32> -> vector<2x128xf32>
    %304 = arith.addf %302, %303 : vector<2x128xf32>
    %305 = vector.extract_strided_slice %304 {offsets = [0, 0], sizes = [2, 96], strides = [1, 1]} : vector<2x128xf32> to vector<2x96xf32>
    %306 = arith.negf %305 : vector<2x96xf32>
    %307 = math.exp %306 : vector<2x96xf32>
    %cst_47 = arith.constant 1.000000e+00 : f32
    %308 = vector.broadcast %cst_47 : f32 to vector<2x96xf32>
    %309 = arith.addf %308, %307 : vector<2x96xf32>
    %310 = arith.divf %308, %309 : vector<2x96xf32>
    %311 = vector.extract_strided_slice %304 {offsets = [0, 96], sizes = [2, 32], strides = [1, 1]} : vector<2x128xf32> to vector<2x32xf32>
    %312 = math.tanh %311 : vector<2x32xf32>
    %313 = vector.extract_strided_slice %310 {offsets = [0, 0], sizes = [2, 32], strides = [1, 1]} : vector<2x96xf32> to vector<2x32xf32>
    %314 = vector.extract_strided_slice %310 {offsets = [0, 32], sizes = [2, 32], strides = [1, 1]} : vector<2x96xf32> to vector<2x32xf32>
    %315 = vector.extract_strided_slice %310 {offsets = [0, 64], sizes = [2, 32], strides = [1, 1]} : vector<2x96xf32> to vector<2x32xf32>
    %316 = arith.mulf %314, %278 : vector<2x32xf32>
    %317 = arith.mulf %313, %312 : vector<2x32xf32>
    %318 = arith.addf %316, %317 : vector<2x32xf32>
    %319 = math.tanh %318 : vector<2x32xf32>
    %320 = arith.mulf %315, %319 : vector<2x32xf32>
    %321 = tpu.concatenate %320, %300 in 1 : vector<2x32xf32>, vector<2x32xf32> -> vector<2x64xf32>
    %cst_48 = arith.constant dense<0.000000e+00> : vector<2x128xf32>
    %322 = tpu.matmul %321, %18, %cst_48 {dimension_numbers = #tpu.dot_dimension_numbers<[1], [0], [0], [1], [0, 0, 1, 1], [], []>} : vector<2x64xf32>, vector<64x128xf32>, vector<2x128xf32> -> vector<2x128xf32>
    %323 = vector.broadcast %19 : vector<1x128xf32> to vector<2x128xf32>
    %324 = arith.addf %322, %323 : vector<2x128xf32>
    %325 = vector.extract_strided_slice %324 {offsets = [0, 0], sizes = [2, 96], strides = [1, 1]} : vector<2x128xf32> to vector<2x96xf32>
    %326 = arith.negf %325 : vector<2x96xf32>
    %327 = math.exp %326 : vector<2x96xf32>
    %cst_49 = arith.constant 1.000000e+00 : f32
    %328 = vector.broadcast %cst_49 : f32 to vector<2x96xf32>
    %329 = arith.addf %328, %327 : vector<2x96xf32>
    %330 = arith.divf %328, %329 : vector<2x96xf32>
    %331 = vector.extract_strided_slice %324 {offsets = [0, 96], sizes = [2, 32], strides = [1, 1]} : vector<2x128xf32> to vector<2x32xf32>
    %332 = math.tanh %331 : vector<2x32xf32>
    %333 = vector.extract_strided_slice %330 {offsets = [0, 0], sizes = [2, 32], strides = [1, 1]} : vector<2x96xf32> to vector<2x32xf32>
    %334 = vector.extract_strided_slice %330 {offsets = [0, 32], sizes = [2, 32], strides = [1, 1]} : vector<2x96xf32> to vector<2x32xf32>
    %335 = vector.extract_strided_slice %330 {offsets = [0, 64], sizes = [2, 32], strides = [1, 1]} : vector<2x96xf32> to vector<2x32xf32>
    %336 = arith.mulf %334, %298 : vector<2x32xf32>
    %337 = arith.mulf %333, %332 : vector<2x32xf32>
    %338 = arith.addf %336, %337 : vector<2x32xf32>
    %339 = math.tanh %338 : vector<2x32xf32>
    %340 = arith.mulf %335, %339 : vector<2x32xf32>
    %341 = tpu.concatenate %60, %100, %140, %180, %220, %260, %300, %340 in 1 : vector<2x32xf32>, vector<2x32xf32>, vector<2x32xf32>, vector<2x32xf32>, vector<2x32xf32>, vector<2x32xf32>, vector<2x32xf32>, vector<2x32xf32> -> vector<2x256xf32>
    %c0_50 = arith.constant 0 : index
    %c0_51 = arith.constant 0 : index
    %342 = vector.load %arg8[%c0_50, %c0_51] : memref<256x32xf32, #tpu.memory_space<vmem>>, vector<256x32xf32>
    %cst_52 = arith.constant dense<0.000000e+00> : vector<2x32xf32>
    %343 = tpu.matmul %341, %342, %cst_52 {dimension_numbers = #tpu.dot_dimension_numbers<[1], [0], [0], [1], [0, 0, 1, 1], [], []>} : vector<2x256xf32>, vector<256x32xf32>, vector<2x32xf32> -> vector<2x32xf32>
    %c0_53 = arith.constant 0 : index
    %c0_54 = arith.constant 0 : index
    %344 = vector.load %arg9[%c0_53, %c0_54] : memref<1x32xf32, #tpu.memory_space<vmem>>, vector<1x32xf32>
    %345 = vector.broadcast %344 : vector<1x32xf32> to vector<2x32xf32>
    %346 = arith.addf %343, %345 : vector<2x32xf32>
    %c0_55 = arith.constant 0 : index
    %c0_56 = arith.constant 0 : index
    %347 = vector.load %arg12[%c0_55, %c0_56] : memref<32x5xf32, #tpu.memory_space<vmem>>, vector<32x5xf32>
    %cst_57 = arith.constant dense<0.000000e+00> : vector<2x5xf32>
    %348 = tpu.matmul %346, %347, %cst_57 {dimension_numbers = #tpu.dot_dimension_numbers<[1], [0], [0], [1], [0, 0, 1, 1], [], []>} : vector<2x32xf32>, vector<32x5xf32>, vector<2x5xf32> -> vector<2x5xf32>
    %c0_58 = arith.constant 0 : index
    %c0_59 = arith.constant 0 : index
    %349 = vector.load %arg13[%c0_58, %c0_59] : memref<32x5xf32, #tpu.memory_space<vmem>>, vector<32x5xf32>
    %cst_60 = arith.constant dense<0.000000e+00> : vector<2x5xf32>
    %350 = tpu.matmul %5, %349, %cst_60 {dimension_numbers = #tpu.dot_dimension_numbers<[1], [0], [0], [1], [0, 0, 1, 1], [], []>} : vector<2x32xf32>, vector<32x5xf32>, vector<2x5xf32> -> vector<2x5xf32>
    %351 = arith.addf %348, %350 : vector<2x5xf32>
    %c0_61 = arith.constant 0 : index
    %c0_62 = arith.constant 0 : index
    %352 = vector.load %arg14[%c0_61, %c0_62] : memref<1x5xf32, #tpu.memory_space<vmem>>, vector<1x5xf32>
    %353 = vector.broadcast %352 : vector<1x5xf32> to vector<2x5xf32>
    %354 = arith.addf %351, %353 : vector<2x5xf32>
    %c0_63 = arith.constant 0 : index
    %c0_64 = arith.constant 0 : index
    %355 = vector.load %arg15[%c0_63, %c0_64] : memref<2x5xf32, #tpu.memory_space<vmem>>, vector<2x5xf32>
    tpu.vector_store %arg15[%c0_63, %c0_64], %354 {strides = array<i32>} : memref<2x5xf32, #tpu.memory_space<vmem>>, vector<2x5xf32>,
    return
  }
  func.func @transform_0(%arg0: i32) -> (i32, i32) {
    %c0_i32 = arith.constant 0 : i32
    %c0_i32_0 = arith.constant 0 : i32
    %c0_i32_1 = arith.constant 0 : i32
    return %c0_i32, %c0_i32_0 : i32, i32
  }
  func.func @transform_1(%arg0: i32) -> (i32, i32) {
    %c0_i32 = arith.constant 0 : i32
    %c0_i32_0 = arith.constant 0 : i32
    %c0_i32_1 = arith.constant 0 : i32
    return %c0_i32, %c0_i32_0 : i32, i32
  }
  func.func @transform_2(%arg0: i32) -> (i32, i32) {
    %c0_i32 = arith.constant 0 : i32
    %c0_i32_0 = arith.constant 0 : i32
    %c0_i32_1 = arith.constant 0 : i32
    return %c0_i32, %c0_i32_0 : i32, i32
  }
  func.func @transform_3(%arg0: i32) -> (i32, i32) {
    %c0_i32 = arith.constant 0 : i32
    %c0_i32_0 = arith.constant 0 : i32
    %c0_i32_1 = arith.constant 0 : i32
    return %c0_i32, %c0_i32_0 : i32, i32
  }
  func.func @transform_4(%arg0: i32) -> (i32, i32) {
    %c0_i32 = arith.constant 0 : i32
    %c0_i32_0 = arith.constant 0 : i32
    %c0_i32_1 = arith.constant 0 : i32
    return %c0_i32, %c0_i32_0 : i32, i32
  }
  func.func @transform_5(%arg0: i32) -> (i32, i32) {
    %c0_i32 = arith.constant 0 : i32
    %c0_i32_0 = arith.constant 0 : i32
    %c0_i32_1 = arith.constant 0 : i32
    return %c0_i32, %c0_i32_0 : i32, i32
  }
  func.func @transform_6(%arg0: i32) -> (i32, i32) {
    %c0_i32 = arith.constant 0 : i32
    %c0_i32_0 = arith.constant 0 : i32
    %c0_i32_1 = arith.constant 0 : i32
    return %c0_i32, %c0_i32_0 : i32, i32
  }
  func.func @transform_7(%arg0: i32) -> (i32, i32) {
    %c0_i32 = arith.constant 0 : i32
    %c0_i32_0 = arith.constant 0 : i32
    %c0_i32_1 = arith.constant 0 : i32
    return %c0_i32, %c0_i32_0 : i32, i32
  }
  func.func @transform_8(%arg0: i32) -> (i32, i32) {
    %c0_i32 = arith.constant 0 : i32
    %c0_i32_0 = arith.constant 0 : i32
    %c0_i32_1 = arith.constant 0 : i32
    return %c0_i32, %c0_i32_0 : i32, i32
  }
  func.func @transform_9(%arg0: i32) -> (i32, i32) {
    %c0_i32 = arith.constant 0 : i32
    %c0_i32_0 = arith.constant 0 : i32
    %c0_i32_1 = arith.constant 0 : i32
    return %c0_i32, %c0_i32_0 : i32, i32
  }
  func.func @transform_10(%arg0: i32) -> (i32, i32) {
    %c0_i32 = arith.constant 0 : i32
    %c0_i32_0 = arith.constant 0 : i32
    %c0_i32_1 = arith.constant 0 : i32
    return %c0_i32, %c0_i32_0 : i32, i32
  }
  func.func @transform_11(%arg0: i32) -> (i32, i32) {
    %c0_i32 = arith.constant 0 : i32
    %c0_i32_0 = arith.constant 0 : i32
    %c0_i32_1 = arith.constant 0 : i32
    return %c0_i32, %c0_i32_0 : i32, i32
  }
  func.func @transform_12(%arg0: i32) -> (i32, i32) {
    %c0_i32 = arith.constant 0 : i32
    %c0_i32_0 = arith.constant 0 : i32
    %c0_i32_1 = arith.constant 0 : i32
    return %c0_i32, %c0_i32_0 : i32, i32
  }
  func.func @transform_13(%arg0: i32) -> (i32, i32) {
    %c0_i32 = arith.constant 0 : i32
    %c0_i32_0 = arith.constant 0 : i32
    %c0_i32_1 = arith.constant 0 : i32
    return %c0_i32, %c0_i32_0 : i32, i32
  }
  func.func @transform_14(%arg0: i32) -> (i32, i32) {
    %c0_i32 = arith.constant 0 : i32
    %c0_i32_0 = arith.constant 0 : i32
    %c0_i32_1 = arith.constant 0 : i32
    return %c0_i32, %c0_i32_0 : i32, i32
  }
}

</mosaic_0001>

<bundles_post_ra>
// kernel: tpu_custom_call.1
= control target key start
LH: loop header
LB: loop body
LE: loop exit
PB: predicated region body
PF: predicated region fallthrough
CT: control target
= control target key end

     0   :  { %v142_v3 = vlaneseq  ;;  %v3020_v4 = vmov 0.0|0.0   ;;  %vm3021_vm0 = vmmov 0   ;;  %v3022_v7 = vmov 0.0   ;;  %s3704_s0 = inlined_call_operand.vmem [shape: f32[8,2], index: 0, kind: input, shape index: {}]   ;;  %s3705_s1 = inlined_call_operand.vmem [shape: f32[2,39], index: 1, kind: input, shape index: {}]   ;;  %s3706_s2 = inlined_call_operand.vmem [shape: f32[1,128], index: 2, kind: input, shape index: {}]   ;;  %s3707_s3 = inlined_call_operand.vmem [shape: f32[32,128], index: 3, kind: input, shape index: {}]   ;;  %s3708_s4 = inlined_call_operand.vmem [shape: f32[1,128], index: 4, kind: input, shape index: {}]   ;;  %s3709_s5 = inlined_call_operand.vmem [shape: f32[64,128], index: 5, kind: input, shape index: {}]   ;;  %s3710_s6 = inlined_call_operand.vmem [shape: f32[1,128], index: 6, kind: input, shape index: {}]   ;;  %s3711_s7 = inlined_call_operand.vmem [shape: f32[256,32], index: 7, kind: input, shape index: {}]   ;;  %s3712_s8 = inlined_call_operand.vmem [shape: f32[1,32], index: 8, kind: input, shape index: {}]   ;;  %s3713_s9 = inlined_call_operand.vmem [shape: f32[39,32], index: 9, kind: input, shape index: {}]   ;;  %s3714_s10 = inlined_call_operand.vmem [shape: f32[1,32], index: 10, kind: input, shape index: {}]   ;;  %s3715_s11 = inlined_call_operand.vmem [shape: f32[32,5], index: 11, kind: input, shape index: {}]   ;;  %s3716_s12 = inlined_call_operand.vmem [shape: f32[32,5], index: 12, kind: input, shape index: {}]   ;;  %s3717_s13 = inlined_call_operand.vmem [shape: f32[1,5], index: 13, kind: input, shape index: {}]   ;;  %s3718_s14 = inlined_call_operand.hbm [shape: f32[2,5], index: 14, kind: output, shape index: {}]  }
   0x1   :  { %v226_v0 = vld [vmem:[%s3707_s3] sm:$0xff]  ;;  %v227_v1 = vld [vmem:[%s3707_s3 + $0x8] sm:$0xff]  ;;  %v228_v2 = vld [vmem:[%s3707_s3 + $0x10] sm:$0xff]  ;;  %2660 = vmatprep.subr.bf16.mxu1 %v3020_v4  ;;  %2400 = vmatprep.mubr.msk.f32.mxu1 %vm3021_vm0, %v3022_v7 }
   0x2   :  { %v3112_v5 = vpack.c.bf16 %v227_v1, %v226_v0  ;;  %v229_v6 = vld [vmem:[%s3707_s3 + $0x18] sm:$0xff]  ;;  %v3119_v8 = vshrl.u32 %v142_v3, 7  ;;  %2654 = vmatprep.subr.bf16.mxu0 %v3020_v4  ;;  %2389 = vmatprep.mubr.msk.f32.mxu0 %vm3021_vm0, %v3022_v7 }
   0x3   :  { %19 = vsyncpa [#allocation3], 0  ;;  %v3125_v9 = vpack.c.bf16 %v229_v6, %v228_v2  ;;  %v3130_v10 = vld [vmem:[%s3704_s0] sm:$0xff]  ;;  %s3023_s26 = smov 32   ;;  %v50_v32 = vld [vmem:[%s3713_s9 + $0x8] sm:$0xff]  ;;  %vm65_vm1 = vcmask 1046528  }
   0x4   :  { %2662 = vmatpush3.bf16.msra.mxu1 %v3112_v5  ;;  %v144_v11 = vsub.s32 0, %v3119_v8  ;;  %v3143_v13 = vld [vmem:[%s3706_s2] ss:$0 sm:$0xff]  ;;  %v231_v35 = vld [vmem:[%s3709_s5 + $0x8] sm:$0xff]  ;;  %v51_v36 = vld [vmem:[%s3713_s9 + $0x10] sm:$0xff]  ;;  %vm61_vm2 = vcmask 318464  }
   0x5   :  { %2663 = vmatprep.subr.bf16.mxu1 %v3020_v4  ;;  %v3149_v16 = vld [vmem:[%s3708_s4] ss:$0 sm:$0xff]  ;;  %v52_v37 = vld [vmem:[%s3713_s9 + $0x18] sm:$0xff]  ;;  %v232_v39 = vld [vmem:[%s3709_s5 + $0x10] sm:$0xff]  ;;  %v151_v52 = vsub.s32 1, %v3119_v8  ;;  %vm239_vm3 = vcmask 261120  }
   0x6   :  { %v145_v12 = vrot.slane %v3130_v10, %v144_v11  ;;  %v49_v31 = vld [vmem:[%s3713_s9] sm:$0xff]  ;;  %v233_v40 = vld [vmem:[%s3709_s5 + $0x18] sm:$0xff]  ;;  %v2658_v41 = vpack.c.bf16 %v52_v37, %v51_v36  ;;  %v235_v44 = vld [vmem:[%s3709_s5 + $0x28] sm:$0xff]  ;;  %vm349_vm4 = vcmask 523264   ;;  %v158_v37 = vsub.s32 2, %v3119_v8  ;;  %s3026_s19 = smov [#allocation2]  }
   0x7   :  { %v230_v33 = vld [vmem:[%s3709_s5] sm:$0xff]  ;;  %v2655_v34 = vpack.c.bf16 %v50_v32, %v49_v31  ;;  %v3185_v42 = vpack.c.bf16 %v233_v40, %v232_v39  ;;  %v236_v49 = vld [vmem:[%s3709_s5 + $0x30] sm:$0xff]  ;;  %v237_v50 = vld [vmem:[%s3709_s5 + $0x38] sm:$0xff]  ;;  %v152_v53 = vrot.slane %v3130_v10, %v151_v52  ;;  %vm1883_vm5 = vcmask 785408  }
   0x8   :  { %2665 = vmatpush3.bf16.msra.mxu1 %v3125_v9  ;;  %147 = vbcast.lane.b32.xlu0 %v145_v12, 256  ;;  %v3175_v38 = vpack.c.bf16 %v231_v35, %v230_v33  ;;  %v234_v43 = vld [vmem:[%s3709_s5 + $0x20] sm:$0xff]  ;;  %v3215_v51 = vpack.c.bf16 %v237_v50, %v236_v49  ;;  %vm2159_vm6 = vcmask 33792  }
   0x9   :  { %2666 = vmatprep.subr.bf16.mxu1 %v3020_v4  ;;  %2656 = vmatpush3.bf16.msra.mxu0 %v2655_v34  ;;  %v53_v45 = vld [vmem:[%s3713_s9 + $0x20] sm:$0x7f]  ;;  %v3203_v47 = vpack.c.bf16 %v235_v44, %v234_v43  ;;  %v159_v43 = vrot.slane %v3130_v10, %v158_v37 }
   0xa   :  { %2657 = vmatprep.subr.bf16.mxu0 %v3020_v4  ;;  %v48_v46 = vld [vmem:[%s3705_s1] sm:$0x3]  ;;  %s3024_s1 = smov 64  }
   0xb   :  { %2401 = vmatmul.mubr.f32.vlgmr.msra.gmra.mrb[0].mxu1 %v3022_v7  ;;  %v3254_v63 = vld [vmem:[%s3710_s6] ss:$0 sm:$0xff]  ;;  %s3025_s6 = smov 96  }
   0xc   :  { %2419 = vmatprep.mubr.msk.f32.mxu1 %vm3021_vm0, %v3022_v7  ;;  %2668 = vmatpush3.bf16.msra.mxu1 %v3175_v38 }
   0xd   :  { %2669 = vmatprep.subr.bf16.mxu1 %v3020_v4  ;;  %2659 = vmatpush3.bf16.msra.mxu0 %v2658_v41 }
   0xe   :  { %2387 = vmatprep.subr.mxu0 %v3022_v7 }
  0x10   :  { %2671 = vmatpush3.bf16.msra.mxu1 %v3185_v42 }
  0x11   :  { %2672 = vmatprep.subr.bf16.mxu1 %v3020_v4  ;;  %2388 = vmatpush3.msk.msra.mxu0 %vm65_vm1, %v53_v45 }
  0x12   :  { %2678 = vmatprep.subr.bf16.mxu0 %v3020_v4  ;;  %2390 = vmatmul.mubr.msk.f32.vlgmr.msra.gmra.mrb[0].mxu0 %vm61_vm2, %v48_v46 }
  0x13   :  { %2680 = vmatpush3.bf16.msra.mxu0 %v3112_v5  ;;  %2430 = vmatprep.mubr.msk.f32.mxu0 %vm3021_vm0, %v3022_v7 }
  0x14   :  { %2674 = vmatpush3.bf16.msra.mxu1 %v3203_v47  ;;  %2681 = vmatprep.subr.bf16.mxu0 %v3020_v4 }
  0x15   :  { %2675 = vmatprep.subr.bf16.mxu1 %v3020_v4 }
  0x17   :  { %2683 = vmatpush3.bf16.msra.mxu0 %v3125_v9 }
  0x18   :  { %2677 = vmatpush3.bf16.msra.mxu1 %v3215_v51  ;;  %2684 = vmatprep.subr.bf16.mxu0 %v3020_v4 }
  0x19   :  { %2696 = vmatprep.subr.bf16.mxu1 %v3020_v4 }
  0x7a   :  { %v148_v14 = vpop.permute.xlu0 %147 }
  0x7b   :  { %v204_v15 = vmul.f32 %v3143_v13, %v148_v14 }
  0x7d   :  { %v218_v17 = vadd.f32 %v3149_v16, %v204_v15 }
  0xde   :  { %v309_v18 = vpop.f32.mrb[0].mxu1 }
  0xdf   :  { %v313_v19 = vadd.f32 %v309_v18, %v218_v17  ;;  %v2402_v20 = vpop.f32.mrb[1].mxu1 }
  0xe1   :  { %2865 = vtanh.f32 %v313_v19  ;;  %v2180_v22 = vmul.f32 -1.442695, %v313_v19 }
  0xe3   :  { %2867 = vpow2.f32 %v2180_v22 }
  0xe5   :  { %v3228_v56 = vpop.f32.mrb[0].mxu0 }
  0xe6   :  { %v2391_v57 = vpop.f32.mrb[1].mxu0 }
  0xeb   :  { %v2866_v21 = vpop.eup %2865 }
  0xec   :  { %323 = vrot.lane.b32.xlu0 %v2866_v21, %s3023_s26 }
  0xed   :  { %v2868_v23 = vpop.eup %2867 }
  0xee   :  { %v317_v24 = vadd.f32 1.0, %v2868_v23 }
  0xf0   :  { %2869 = vrcp.f32 %v317_v24 }
  0xfa   :  { %v2870_v25 = vpop.eup %2869 }
  0xfb   :  { %v321_v28 = vmul.f32 0.0, %v2870_v25 }
 0x15e   :  { %v324_v26 = vpop.permute.xlu0 %323 }
 0x15f   :  { %v326_v27 = vmul.f32 %v2870_v25, %v324_v26 }
 0x161   :  { %328 = vrot.lane.b32.xlu1 %v326_v27, %s3023_s26 }
 0x1d3   :  { %v329_v29 = vpop.permute.xlu1 %328 }
 0x1d4   :  { %v3154_v30 = vadd.f32 %v329_v29, %v321_v28 }
 0x1d6   :  { %2871 = vtanh.f32 %v3154_v30 }
 0x1e0   :  { %v2872_v48 = vpop.eup %2871 }
 0x1e1   :  { %334 = vrot.lane.b32.xlu1 %v2872_v48, %s3023_s26 }
 0x1e5   :  { %154 = vbcast.lane.b32.xlu1 %v152_v53, 256 }
 0x253   :  { %v335_v54 = vpop.permute.xlu1 %334 }
 0x254   :  { %v337_v55 = vmul.f32 %v2870_v25, %v335_v54 }
 0x256   :  { %339 = vrot.lane.b32.xlu0 %v337_v55, %s3024_s1 }
 0x257   :  { %v155_v60 = vpop.permute.xlu1 %154 }
 0x258   :  { %v205_v61 = vmul.f32 %v3143_v13, %v155_v60 }
 0x25a   :  { %v219_v62 = vadd.f32 %v3149_v16, %v205_v61 }
 0x2c8   :  { %v340_v58 = vpop.permute.xlu0 %339 }
 0x2c9   :  { %v342_v59 = vsel %vm239_vm3, %v340_v58, 0.0  ;;  %2431 = vmatmul.mubr.msk.f32.vlgmr.msra.gmra.mrb[2].mxu0 %vm239_vm3, %v340_v58 }
 0x2ca   :  { %2420 = vmatmul.mubr.msk.f32.vlgmr.msra.gmra.mrb[2].mxu1 %vm349_vm4, %v342_v59  ;;  %2686 = vmatpush3.bf16.msra.mxu0 %v3175_v38 }
 0x2cb   :  { %2687 = vmatprep.subr.bf16.mxu0 %v3020_v4  ;;  %2698 = vmatpush3.bf16.msra.mxu1 %v3112_v5 }
 0x2cc   :  { %2699 = vmatprep.subr.bf16.mxu1 %v3020_v4  ;;  %2460 = vmatprep.mubr.msk.f32.mxu1 %vm3021_vm0, %v3022_v7 }
 0x2cd   :  { %2449 = vmatprep.mubr.msk.f32.mxu0 %vm3021_vm0, %v3022_v7 }
 0x2ce   :  { %2689 = vmatpush3.bf16.msra.mxu0 %v3185_v42 }
 0x2cf   :  { %2690 = vmatprep.subr.bf16.mxu0 %v3020_v4  ;;  %2701 = vmatpush3.bf16.msra.mxu1 %v3125_v9 }
 0x2d0   :  { %2702 = vmatprep.subr.bf16.mxu1 %v3020_v4 }
 0x2d2   :  { %2692 = vmatpush3.bf16.msra.mxu0 %v3203_v47 }
 0x2d3   :  { %2693 = vmatprep.subr.bf16.mxu0 %v3020_v4 }
 0x2d6   :  { %2695 = vmatpush3.bf16.msra.mxu0 %v3215_v51 }
 0x2d7   :  { %2714 = vmatprep.subr.bf16.mxu0 %v3020_v4 }
 0x39c   :  { %v515_v0 = vpop.f32.mrb[2].mxu0 }
 0x39d   :  { %v519_v1 = vadd.f32 %v515_v0, %v219_v62  ;;  %v419_v2 = vpop.f32.mrb[2].mxu1  ;;  %v2432_v3 = vpop.f32.mrb[3].mxu0 }
 0x39e   :  { %v420_v6 = vadd.f32 %v3254_v63, %v419_v2  ;;  %v2421_v11 = vpop.f32.mrb[3].mxu1 }
 0x39f   :  { %2873 = vtanh.f32 %v519_v1  ;;  %v2185_v15 = vmul.f32 -1.442695, %v519_v1 }
 0x3a0   :  { %2875 = vtanh.f32 %v420_v6  ;;  %v2183_v17 = vmul.f32 -1.442695, %v420_v6 }
 0x3a1   :  { %2877 = vpow2.f32 %v2185_v15 }
 0x3a2   :  { %2879 = vpow2.f32 %v2183_v17 }
 0x3a9   :  { %v2874_v12 = vpop.eup %2873 }
 0x3aa   :  { %v2876_v14 = vpop.eup %2875  ;;  %529 = vrot.lane.b32.xlu1 %v2874_v12, %s3023_s26 }
 0x3ab   :  { %432 = vrot.lane.b32.xlu0 %v2876_v14, %s3023_s26  ;;  %v2878_v18 = vpop.eup %2877 }
 0x3ac   :  { %v2880_v19 = vpop.eup %2879  ;;  %v523_v20 = vadd.f32 1.0, %v2878_v18 }
 0x3ad   :  { %v426_v21 = vadd.f32 1.0, %v2880_v19 }
 0x3ae   :  { %2881 = vrcp.f32 %v523_v20 }
 0x3af   :  { %2883 = vrcp.f32 %v426_v21 }
 0x3b8   :  { %v2882_v22 = vpop.eup %2881 }
 0x3b9   :  { %v2884_v24 = vpop.eup %2883  ;;  %v527_v28 = vmul.f32 %v2882_v22, %v3154_v30 }
 0x3ba   :  { %v430_v31 = vmul.f32 0.0, %v2884_v24 }
 0x41c   :  { %v530_v23 = vpop.permute.xlu1 %529 }
 0x41d   :  { %v532_v25 = vmul.f32 %v2882_v22, %v530_v23  ;;  %v433_v26 = vpop.permute.xlu0 %432 }
 0x41e   :  { %v435_v27 = vmul.f32 %v2884_v24, %v433_v26  ;;  %v165_v26 = vsub.s32 3, %v3119_v8 }
 0x41f   :  { %534 = vrot.lane.b32.xlu1 %v532_v25, %s3023_s26 }
 0x420   :  { %437 = vrot.lane.b32.xlu0 %v435_v27, %s3023_s26 }
 0x491   :  { %v535_v29 = vpop.permute.xlu1 %534 }
 0x492   :  { %v3262_v32 = vadd.f32 %v535_v29, %v527_v28  ;;  %v438_v33 = vpop.permute.xlu0 %437 }
 0x493   :  { %v3264_v34 = vadd.f32 %v438_v33, %v430_v31  ;;  %v166_v31 = vrot.slane %v3130_v10, %v165_v26 }
 0x494   :  { %2885 = vtanh.f32 %v3262_v32 }
 0x495   :  { %2887 = vtanh.f32 %v3264_v34 }
 0x49e   :  { %v2886_v35 = vpop.eup %2885 }
 0x49f   :  { %v2888_v36 = vpop.eup %2887  ;;  %540 = vrot.lane.b32.xlu1 %v2886_v35, %s3023_s26 }
 0x4a0   :  { %443 = vrot.lane.b32.xlu0 %v2888_v36, %s3023_s26 }
 0x511   :  { %v541_v30 = vpop.permute.xlu1 %540 }
 0x512   :  { %v543_v39 = vmul.f32 %v2882_v22, %v541_v30  ;;  %v444_v40 = vpop.permute.xlu0 %443 }
 0x513   :  { %v3271_v41 = vmul.f32 %v2884_v24, %v444_v40 }
 0x514   :  { %545 = vrot.lane.b32.xlu0 %v543_v39, %s3024_s1 }
 0x515   :  { %549 = vrot.lane.b32.xlu1 %v3271_v41, %s3025_s6 }
 0x518   :  { %161 = vbcast.lane.b32.xlu0 %v159_v43, 256 }
 0x586   :  { %v546_v44 = vpop.permute.xlu0 %545 }
 0x587   :  { %2461 = vmatmul.mubr.msk.f32.vlgmr.msra.gmra.mrb[4].mxu1 %vm239_vm3, %v546_v44  ;;  %v550_v45 = vpop.permute.xlu1 %549 }
 0x588   :  { %v552_v46 = vsel %vm239_vm3, %v546_v44, %v550_v45  ;;  %2704 = vmatpush3.bf16.msra.mxu1 %v3175_v38  ;;  %2479 = vmatprep.mubr.msk.f32.mxu1 %vm3021_vm0, %v3022_v7 }
 0x589   :  { %2450 = vmatmul.mubr.msk.f32.vlgmr.msra.gmra.mrb[4].mxu0 %vm349_vm4, %v552_v46  ;;  %2705 = vmatprep.subr.bf16.mxu1 %v3020_v4 }
 0x58a   :  { %2716 = vmatpush3.bf16.msra.mxu0 %v3112_v5  ;;  %2490 = vmatprep.mubr.msk.f32.mxu0 %vm3021_vm0, %v3022_v7  ;;  %v162_v48 = vpop.permute.xlu0 %161 }
 0x58b   :  { %2717 = vmatprep.subr.bf16.mxu0 %v3020_v4  ;;  %v206_v49 = vmul.f32 %v3143_v13, %v162_v48 }
 0x58c   :  { %2707 = vmatpush3.bf16.msra.mxu1 %v3185_v42 }
 0x58d   :  { %2708 = vmatprep.subr.bf16.mxu1 %v3020_v4  ;;  %v220_v50 = vadd.f32 %v3149_v16, %v206_v49 }
 0x58e   :  { %2719 = vmatpush3.bf16.msra.mxu0 %v3125_v9 }
 0x58f   :  { %2720 = vmatprep.subr.bf16.mxu0 %v3020_v4 }
 0x590   :  { %2710 = vmatpush3.bf16.msra.mxu1 %v3203_v47 }
 0x591   :  { %2711 = vmatprep.subr.bf16.mxu1 %v3020_v4 }
 0x594   :  { %2713 = vmatpush3.bf16.msra.mxu1 %v3215_v51 }
 0x595   :  { %2732 = vmatprep.subr.bf16.mxu1 %v3020_v4 }
 0x65a   :  { %v718_v52 = vpop.f32.mrb[4].mxu1 }
 0x65b   :  { %v722_v53 = vadd.f32 %v718_v52, %v220_v50  ;;  %v2462_v54 = vpop.f32.mrb[5].mxu1 }
 0x65c   :  { %v622_v55 = vpop.f32.mrb[4].mxu0 }
 0x65d   :  { %2889 = vtanh.f32 %v722_v53  ;;  %v623_v57 = vadd.f32 %v3254_v63, %v622_v55  ;;  %v2451_v58 = vpop.f32.mrb[5].mxu0  ;;  %v2189_v61 = vmul.f32 -1.442695, %v722_v53 }
 0x65f   :  { %2891 = vtanh.f32 %v623_v57  ;;  %v2187_v62 = vmul.f32 -1.442695, %v623_v57 }
 0x660   :  { %2893 = vpow2.f32 %v2189_v61 }
 0x661   :  { %2895 = vpow2.f32 %v2187_v62 }
 0x667   :  { %v2890_v59 = vpop.eup %2889 }
 0x668   :  { %732 = vrot.lane.b32.xlu0 %v2890_v59, %s3023_s26 }
 0x669   :  { %v2892_v60 = vpop.eup %2891 }
 0x66a   :  { %635 = vrot.lane.b32.xlu1 %v2892_v60, %s3023_s26  ;;  %v2894_v0 = vpop.eup %2893 }
 0x66b   :  { %v2896_v1 = vpop.eup %2895  ;;  %v726_v2 = vadd.f32 1.0, %v2894_v0 }
 0x66c   :  { %v629_v3 = vadd.f32 1.0, %v2896_v1 }
 0x66d   :  { %2897 = vrcp.f32 %v726_v2 }
 0x66e   :  { %2899 = vrcp.f32 %v629_v3 }
 0x677   :  { %v2898_v6 = vpop.eup %2897 }
 0x678   :  { %v2900_v14 = vpop.eup %2899  ;;  %v730_v18 = vmul.f32 %v2898_v6, %v3262_v32 }
 0x679   :  { %v633_v21 = vmul.f32 %v2900_v14, %v3264_v34 }
 0x6da   :  { %v733_v11 = vpop.permute.xlu0 %732 }
 0x6db   :  { %v735_v12 = vmul.f32 %v2898_v6, %v733_v11 }
 0x6dc   :  { %v636_v15 = vpop.permute.xlu1 %635 }
 0x6dd   :  { %737 = vrot.lane.b32.xlu0 %v735_v12, %s3023_s26  ;;  %v638_v17 = vmul.f32 %v2900_v14, %v636_v15 }
 0x6df   :  { %640 = vrot.lane.b32.xlu1 %v638_v17, %s3023_s26  ;;  %v172_v17 = vsub.s32 4, %v3119_v8 }
 0x74f   :  { %v738_v19 = vpop.permute.xlu0 %737 }
 0x750   :  { %v3304_v20 = vadd.f32 %v738_v19, %v730_v18 }
 0x751   :  { %v641_v22 = vpop.permute.xlu1 %640 }
 0x752   :  { %2901 = vtanh.f32 %v3304_v20  ;;  %v3308_v23 = vadd.f32 %v641_v22, %v633_v21 }
 0x754   :  { %2903 = vtanh.f32 %v3308_v23 }
 0x75c   :  { %v2902_v24 = vpop.eup %2901 }
 0x75d   :  { %743 = vrot.lane.b32.xlu0 %v2902_v24, %s3023_s26 }
 0x75e   :  { %v2904_v25 = vpop.eup %2903 }
 0x75f   :  { %646 = vrot.lane.b32.xlu1 %v2904_v25, %s3023_s26 }
 0x7cf   :  { %v744_v27 = vpop.permute.xlu0 %743 }
 0x7d0   :  { %v746_v28 = vmul.f32 %v2898_v6, %v744_v27 }
 0x7d1   :  { %v647_v29 = vpop.permute.xlu1 %646 }
 0x7d2   :  { %748 = vrot.lane.b32.xlu1 %v746_v28, %s3024_s1  ;;  %v649_v32 = vmul.f32 %v2900_v14, %v647_v29 }
 0x7d4   :  { %752 = vrot.lane.b32.xlu0 %v649_v32, %s3025_s6 }
 0x7d6   :  { %168 = vbcast.lane.b32.xlu1 %v166_v31, 256 }
 0x844   :  { %v749_v33 = vpop.permute.xlu1 %748 }
 0x845   :  { %2491 = vmatmul.mubr.msk.f32.vlgmr.msra.gmra.mrb[6].mxu0 %vm239_vm3, %v749_v33 }
 0x846   :  { %2722 = vmatpush3.bf16.msra.mxu0 %v3175_v38  ;;  %2509 = vmatprep.mubr.msk.f32.mxu0 %vm3021_vm0, %v3022_v7  ;;  %v3321_v34 = vpop.permute.xlu0 %752 }
 0x847   :  { %2723 = vmatprep.subr.bf16.mxu0 %v3020_v4  ;;  %v755_v35 = vsel %vm239_vm3, %v749_v33, %v3321_v34 }
 0x848   :  { %2480 = vmatmul.mubr.msk.f32.vlgmr.msra.gmra.mrb[6].mxu1 %vm349_vm4, %v755_v35  ;;  %v169_v36 = vpop.permute.xlu1 %168 }
 0x849   :  { %2734 = vmatpush3.bf16.msra.mxu1 %v3112_v5  ;;  %2520 = vmatprep.mubr.msk.f32.mxu1 %vm3021_vm0, %v3022_v7  ;;  %v207_v37 = vmul.f32 %v3143_v13, %v169_v36 }
 0x84a   :  { %2725 = vmatpush3.bf16.msra.mxu0 %v3185_v42  ;;  %2735 = vmatprep.subr.bf16.mxu1 %v3020_v4 }
 0x84b   :  { %2726 = vmatprep.subr.bf16.mxu0 %v3020_v4  ;;  %v221_v30 = vadd.f32 %v3149_v16, %v207_v37 }
 0x84d   :  { %2737 = vmatpush3.bf16.msra.mxu1 %v3125_v9 }
 0x84e   :  { %2728 = vmatpush3.bf16.msra.mxu0 %v3203_v47  ;;  %2738 = vmatprep.subr.bf16.mxu1 %v3020_v4 }
 0x84f   :  { %2729 = vmatprep.subr.bf16.mxu0 %v3020_v4 }
 0x852   :  { %2731 = vmatpush3.bf16.msra.mxu0 %v3215_v51 }
 0x853   :  { %2750 = vmatprep.subr.bf16.mxu0 %v3020_v4 }
 0x918   :  { %v921_v39 = vpop.f32.mrb[6].mxu0 }
 0x919   :  { %v925_v40 = vadd.f32 %v921_v39, %v221_v30  ;;  %v2492_v43 = vpop.f32.mrb[7].mxu0 }
 0x91b   :  { %2905 = vtanh.f32 %v925_v40  ;;  %v825_v44 = vpop.f32.mrb[6].mxu1  ;;  %v2193_v50 = vmul.f32 -1.442695, %v925_v40 }
 0x91c   :  { %v826_v45 = vadd.f32 %v3254_v63, %v825_v44  ;;  %v2481_v46 = vpop.f32.mrb[7].mxu1 }
 0x91e   :  { %2907 = vtanh.f32 %v826_v45  ;;  %v2191_v52 = vmul.f32 -1.442695, %v826_v45 }
 0x91f   :  { %2909 = vpow2.f32 %v2193_v50 }
 0x920   :  { %2911 = vpow2.f32 %v2191_v52 }
 0x925   :  { %v2906_v48 = vpop.eup %2905 }
 0x926   :  { %935 = vrot.lane.b32.xlu1 %v2906_v48, %s3023_s26 }
 0x928   :  { %v2908_v49 = vpop.eup %2907 }
 0x929   :  { %838 = vrot.lane.b32.xlu0 %v2908_v49, %s3023_s26  ;;  %v2910_v53 = vpop.eup %2909 }
 0x92a   :  { %v929_v54 = vadd.f32 1.0, %v2910_v53  ;;  %v2912_v55 = vpop.eup %2911 }
 0x92b   :  { %v832_v57 = vadd.f32 1.0, %v2912_v55 }
 0x92c   :  { %2913 = vrcp.f32 %v929_v54 }
 0x92d   :  { %2915 = vrcp.f32 %v832_v57 }
 0x936   :  { %v2914_v58 = vpop.eup %2913 }
 0x937   :  { %v2916_v61 = vpop.eup %2915  ;;  %v933_v1 = vmul.f32 %v2914_v58, %v3304_v20  ;;  %v173_v20 = vrot.slane %v3130_v10, %v172_v17 }
 0x938   :  { %v836_v6 = vmul.f32 %v2916_v61, %v3308_v23 }
 0x998   :  { %v936_v59 = vpop.permute.xlu1 %935 }
 0x999   :  { %v938_v60 = vmul.f32 %v2914_v58, %v936_v59 }
 0x99b   :  { %940 = vrot.lane.b32.xlu1 %v938_v60, %s3023_s26  ;;  %v839_v62 = vpop.permute.xlu0 %838 }
 0x99c   :  { %v841_v0 = vmul.f32 %v2916_v61, %v839_v62 }
 0x99e   :  { %843 = vrot.lane.b32.xlu0 %v841_v0, %s3023_s26 }
 0xa0d   :  { %v941_v2 = vpop.permute.xlu1 %940 }
 0xa0e   :  { %v3347_v3 = vadd.f32 %v941_v2, %v933_v1  ;;  %v179_v1 = vsub.s32 5, %v3119_v8 }
 0xa10   :  { %2917 = vtanh.f32 %v3347_v3  ;;  %v844_v11 = vpop.permute.xlu0 %843 }
 0xa11   :  { %v3351_v12 = vadd.f32 %v844_v11, %v836_v6  ;;  %v180_v6 = vrot.slane %v3130_v10, %v179_v1 }
 0xa13   :  { %2919 = vtanh.f32 %v3351_v12 }
 0xa1a   :  { %v2918_v14 = vpop.eup %2917 }
 0xa1b   :  { %946 = vrot.lane.b32.xlu1 %v2918_v14, %s3023_s26 }
 0xa1d   :  { %v2920_v15 = vpop.eup %2919 }
 0xa1e   :  { %849 = vrot.lane.b32.xlu0 %v2920_v15, %s3023_s26 }
 0xa8d   :  { %v947_v18 = vpop.permute.xlu1 %946 }
 0xa8e   :  { %v949_v19 = vmul.f32 %v2914_v58, %v947_v18 }
 0xa90   :  { %951 = vrot.lane.b32.xlu0 %v949_v19, %s3024_s1  ;;  %v850_v21 = vpop.permute.xlu0 %849 }
 0xa91   :  { %v3359_v22 = vmul.f32 %v2916_v61, %v850_v21 }
 0xa93   :  { %955 = vrot.lane.b32.xlu1 %v3359_v22, %s3025_s6 }
 0xa94   :  { %175 = vbcast.lane.b32.xlu0 %v173_v20, 256 }
 0xb02   :  { %v952_v23 = vpop.permute.xlu0 %951 }
 0xb03   :  { %2521 = vmatmul.mubr.msk.f32.vlgmr.msra.gmra.mrb[8].mxu1 %vm239_vm3, %v952_v23 }
 0xb04   :  { %2740 = vmatpush3.bf16.msra.mxu1 %v3175_v38  ;;  %2539 = vmatprep.mubr.msk.f32.mxu1 %vm3021_vm0, %v3022_v7 }
 0xb05   :  { %2741 = vmatprep.subr.bf16.mxu1 %v3020_v4  ;;  %v956_v24 = vpop.permute.xlu1 %955 }
 0xb06   :  { %v958_v25 = vsel %vm239_vm3, %v952_v23, %v956_v24  ;;  %v176_v26 = vpop.permute.xlu0 %175 }
 0xb07   :  { %2510 = vmatmul.mubr.msk.f32.vlgmr.msra.gmra.mrb[8].mxu0 %vm349_vm4, %v958_v25  ;;  %v208_v27 = vmul.f32 %v3143_v13, %v176_v26 }
 0xb08   :  { %2743 = vmatpush3.bf16.msra.mxu1 %v3185_v42  ;;  %2752 = vmatpush3.bf16.msra.mxu0 %v3112_v5 }
 0xb09   :  { %2744 = vmatprep.subr.bf16.mxu1 %v3020_v4  ;;  %2753 = vmatprep.subr.bf16.mxu0 %v3020_v4  ;;  %v222_v28 = vadd.f32 %v3149_v16, %v208_v27 }
 0xb0a   :  { %2550 = vmatprep.mubr.msk.f32.mxu0 %vm3021_vm0, %v3022_v7 }
 0xb0c   :  { %2746 = vmatpush3.bf16.msra.mxu1 %v3203_v47  ;;  %2755 = vmatpush3.bf16.msra.mxu0 %v3125_v9 }
 0xb0d   :  { %2747 = vmatprep.subr.bf16.mxu1 %v3020_v4  ;;  %2756 = vmatprep.subr.bf16.mxu0 %v3020_v4 }
 0xb10   :  { %2749 = vmatpush3.bf16.msra.mxu1 %v3215_v51 }
 0xb11   :  { %2768 = vmatprep.subr.bf16.mxu1 %v3020_v4 }
 0xbd6   :  { %v1124_v29 = vpop.f32.mrb[8].mxu1 }
 0xbd7   :  { %v1128_v31 = vadd.f32 %v1124_v29, %v222_v28  ;;  %v2522_v32 = vpop.f32.mrb[9].mxu1 }
 0xbd9   :  { %2921 = vtanh.f32 %v1128_v31  ;;  %v2197_v39 = vmul.f32 -1.442695, %v1128_v31 }
 0xbda   :  { %v1028_v33 = vpop.f32.mrb[8].mxu0 }
 0xbdb   :  { %v1029_v35 = vadd.f32 %v3254_v63, %v1028_v33  ;;  %v2511_v36 = vpop.f32.mrb[9].mxu0 }
 0xbdd   :  { %2923 = vtanh.f32 %v1029_v35  ;;  %v2195_v40 = vmul.f32 -1.442695, %v1029_v35 }
 0xbde   :  { %2925 = vpow2.f32 %v2197_v39 }
 0xbdf   :  { %2927 = vpow2.f32 %v2195_v40 }
 0xbe3   :  { %v2922_v37 = vpop.eup %2921 }
 0xbe4   :  { %1138 = vrot.lane.b32.xlu0 %v2922_v37, %s3023_s26 }
 0xbe7   :  { %v2924_v30 = vpop.eup %2923 }
 0xbe8   :  { %1041 = vrot.lane.b32.xlu1 %v2924_v30, %s3023_s26  ;;  %v2926_v43 = vpop.eup %2925 }
 0xbe9   :  { %v1132_v44 = vadd.f32 1.0, %v2926_v43  ;;  %v2928_v45 = vpop.eup %2927 }
 0xbea   :  { %v1035_v46 = vadd.f32 1.0, %v2928_v45 }
 0xbeb   :  { %2929 = vrcp.f32 %v1132_v44 }
 0xbec   :  { %2931 = vrcp.f32 %v1035_v46 }
 0xbf5   :  { %v2930_v48 = vpop.eup %2929 }
 0xbf6   :  { %v2932_v52 = vpop.eup %2931  ;;  %v1136_v55 = vmul.f32 %v2930_v48, %v3347_v3 }
 0xbf7   :  { %v1039_v59 = vmul.f32 %v2932_v52, %v3351_v12 }
 0xc56   :  { %v1139_v49 = vpop.permute.xlu0 %1138 }
 0xc57   :  { %v1141_v50 = vmul.f32 %v2930_v48, %v1139_v49 }
 0xc59   :  { %1143 = vrot.lane.b32.xlu0 %v1141_v50, %s3023_s26 }
 0xc5a   :  { %v1042_v53 = vpop.permute.xlu1 %1041 }
 0xc5b   :  { %v1044_v54 = vmul.f32 %v2932_v52, %v1042_v53 }
 0xc5d   :  { %1046 = vrot.lane.b32.xlu1 %v1044_v54, %s3023_s26 }
 0xccb   :  { %v1144_v57 = vpop.permute.xlu0 %1143 }
 0xccc   :  { %v3390_v58 = vadd.f32 %v1144_v57, %v1136_v55  ;;  %v186_v57 = vsub.s32 6, %v3119_v8 }
 0xcce   :  { %2933 = vtanh.f32 %v3390_v58 }
 0xccf   :  { %v1047_v60 = vpop.permute.xlu1 %1046 }
 0xcd0   :  { %v3394_v61 = vadd.f32 %v1047_v60, %v1039_v59  ;;  %v187_v60 = vrot.slane %v3130_v10, %v186_v57 }
 0xcd2   :  { %2935 = vtanh.f32 %v3394_v61 }
 0xcd8   :  { %v2934_v62 = vpop.eup %2933 }
 0xcd9   :  { %1149 = vrot.lane.b32.xlu0 %v2934_v62, %s3023_s26 }
 0xcdc   :  { %v2936_v0 = vpop.eup %2935 }
 0xcdd   :  { %1052 = vrot.lane.b32.xlu1 %v2936_v0, %s3023_s26 }
 0xd4b   :  { %v1150_v2 = vpop.permute.xlu0 %1149 }
 0xd4c   :  { %v1152_v3 = vmul.f32 %v2930_v48, %v1150_v2 }
 0xd4e   :  { %1154 = vrot.lane.b32.xlu1 %v1152_v3, %s3024_s1 }
 0xd4f   :  { %v1053_v11 = vpop.permute.xlu1 %1052 }
 0xd50   :  { %v3402_v12 = vmul.f32 %v2932_v52, %v1053_v11 }
 0xd52   :  { %182 = vbcast.lane.b32.xlu1 %v180_v6, 256  ;;  %1158 = vrot.lane.b32.xlu0 %v3402_v12, %s3025_s6 }
 0xdc0   :  { %v1155_v14 = vpop.permute.xlu1 %1154 }
 0xdc1   :  { %2551 = vmatmul.mubr.msk.f32.vlgmr.msra.gmra.mrb[10].mxu0 %vm239_vm3, %v1155_v14 }
 0xdc2   :  { %2758 = vmatpush3.bf16.msra.mxu0 %v3175_v38  ;;  %2569 = vmatprep.mubr.msk.f32.mxu0 %vm3021_vm0, %v3022_v7 }
 0xdc3   :  { %2759 = vmatprep.subr.bf16.mxu0 %v3020_v4 }
 0xdc4   :  { %v1159_v15 = vpop.permute.xlu0 %1158  ;;  %v183_v18 = vpop.permute.xlu1 %182 }
 0xdc5   :  { %v1161_v17 = vsel %vm239_vm3, %v1155_v14, %v1159_v15  ;;  %v209_v19 = vmul.f32 %v3143_v13, %v183_v18 }
 0xdc6   :  { %2761 = vmatpush3.bf16.msra.mxu0 %v3185_v42  ;;  %2540 = vmatmul.mubr.msk.f32.vlgmr.msra.gmra.mrb[10].mxu1 %vm349_vm4, %v1161_v17 }
 0xdc7   :  { %2762 = vmatprep.subr.bf16.mxu0 %v3020_v4  ;;  %2770 = vmatpush3.bf16.msra.mxu1 %v3112_v5  ;;  %v223_v20 = vadd.f32 %v3149_v16, %v209_v19 }
 0xdc8   :  { %2580 = vmatprep.mubr.msk.f32.mxu1 %vm3021_vm0, %v3022_v7  ;;  %2771 = vmatprep.subr.bf16.mxu1 %v3020_v4 }
 0xdca   :  { %2764 = vmatpush3.bf16.msra.mxu0 %v3203_v47 }
 0xdcb   :  { %2765 = vmatprep.subr.bf16.mxu0 %v3020_v4  ;;  %2773 = vmatpush3.bf16.msra.mxu1 %v3125_v9 }
 0xdcc   :  { %2774 = vmatprep.subr.bf16.mxu1 %v3020_v4 }
 0xdce   :  { %2767 = vmatpush3.bf16.msra.mxu0 %v3215_v51 }
 0xdcf   :  { %2786 = vmatprep.subr.bf16.mxu0 %v3020_v4 }
 0xe94   :  { %v1327_v21 = vpop.f32.mrb[10].mxu0 }
 0xe95   :  { %v1331_v23 = vadd.f32 %v1327_v21, %v223_v20  ;;  %v2552_v24 = vpop.f32.mrb[11].mxu0 }
 0xe97   :  { %2937 = vtanh.f32 %v1331_v23  ;;  %v2201_v31 = vmul.f32 -1.442695, %v1331_v23 }
 0xe99   :  { %v1231_v25 = vpop.f32.mrb[10].mxu1 }
 0xe9a   :  { %v1232_v26 = vadd.f32 %v3254_v63, %v1231_v25  ;;  %v2541_v27 = vpop.f32.mrb[11].mxu1 }
 0xe9c   :  { %2939 = vtanh.f32 %v1232_v26  ;;  %v2199_v32 = vmul.f32 -1.442695, %v1232_v26 }
 0xe9d   :  { %2941 = vpow2.f32 %v2201_v31 }
 0xe9e   :  { %2943 = vpow2.f32 %v2199_v32 }
 0xea1   :  { %v2938_v28 = vpop.eup %2937 }
 0xea2   :  { %1341 = vrot.lane.b32.xlu1 %v2938_v28, %s3023_s26 }
 0xea6   :  { %v2940_v29 = vpop.eup %2939 }
 0xea7   :  { %1244 = vrot.lane.b32.xlu0 %v2940_v29, %s3023_s26  ;;  %v2942_v33 = vpop.eup %2941 }
 0xea8   :  { %v1335_v35 = vadd.f32 1.0, %v2942_v33  ;;  %v2944_v36 = vpop.eup %2943 }
 0xea9   :  { %v1238_v37 = vadd.f32 1.0, %v2944_v36 }
 0xeaa   :  { %2945 = vrcp.f32 %v1335_v35 }
 0xeab   :  { %2947 = vrcp.f32 %v1238_v37 }
 0xeb4   :  { %v2946_v30 = vpop.eup %2945 }
 0xeb5   :  { %v2948_v43 = vpop.eup %2947  ;;  %v1339_v46 = vmul.f32 %v2946_v30, %v3390_v58 }
 0xeb6   :  { %v1242_v50 = vmul.f32 %v2948_v43, %v3394_v61 }
 0xf14   :  { %v1342_v39 = vpop.permute.xlu1 %1341 }
 0xf15   :  { %v1344_v40 = vmul.f32 %v2946_v30, %v1342_v39 }
 0xf17   :  { %1346 = vrot.lane.b32.xlu1 %v1344_v40, %s3023_s26 }
 0xf19   :  { %v1245_v44 = vpop.permute.xlu0 %1244 }
 0xf1a   :  { %v1247_v45 = vmul.f32 %v2948_v43, %v1245_v44 }
 0xf1c   :  { %1249 = vrot.lane.b32.xlu0 %v1247_v45, %s3023_s26 }
 0xf89   :  { %v1347_v48 = vpop.permute.xlu1 %1346 }
 0xf8a   :  { %v3433_v49 = vadd.f32 %v1347_v48, %v1339_v46  ;;  %v2993_v46 = vld [vmem:[%s3704_s0] sm:$0xff] }
 0xf8c   :  { %2949 = vtanh.f32 %v3433_v49 }
 0xf8e   :  { %v1250_v52 = vpop.permute.xlu0 %1249 }
 0xf8f   :  { %v3437_v53 = vadd.f32 %v1250_v52, %v1242_v50 }
 0xf91   :  { %2951 = vtanh.f32 %v3437_v53 }
 0xf96   :  { %v2950_v54 = vpop.eup %2949 }
 0xf97   :  { %1352 = vrot.lane.b32.xlu1 %v2950_v54, %s3023_s26 }
 0xf9b   :  { %v2952_v55 = vpop.eup %2951 }
 0xf9c   :  { %1255 = vrot.lane.b32.xlu0 %v2952_v55, %s3023_s26  ;;  %v2995_v55 = vld [vmem:[%s3708_s4] ss:$0 sm:$0xff] }
0x1009   :  { %v1353_v58 = vpop.permute.xlu1 %1352 }
0x100a   :  { %v1355_v59 = vmul.f32 %v2946_v30, %v1353_v58 }
0x100c   :  { %1357 = vrot.lane.b32.xlu0 %v1355_v59, %s3024_s1 }
0x100e   :  { %v1256_v61 = vpop.permute.xlu0 %1255 }
0x100f   :  { %v3445_v62 = vmul.f32 %v2948_v43, %v1256_v61  ;;  %v193_v43 = vsub.s32 7, %v3119_v8 }
0x1010   :  { %189 = vbcast.lane.b32.xlu0 %v187_v60, 256 }
0x1011   :  { %1361 = vrot.lane.b32.xlu1 %v3445_v62, %s3025_s6  ;;  %v194_v48 = vrot.slane %v2993_v46, %v193_v43 }
0x107e   :  { %v1358_v0 = vpop.permute.xlu0 %1357 }
0x107f   :  { %2581 = vmatmul.mubr.msk.f32.vlgmr.msra.gmra.mrb[12].mxu1 %vm239_vm3, %v1358_v0 }
0x1080   :  { %2776 = vmatpush3.bf16.msra.mxu1 %v3175_v38  ;;  %2599 = vmatprep.mubr.msk.f32.mxu1 %vm3021_vm0, %v3022_v7 }
0x1081   :  { %2777 = vmatprep.subr.bf16.mxu1 %v3020_v4 }
0x1082   :  { %v190_v2 = vpop.permute.xlu0 %189 }
0x1083   :  { %v1362_v1 = vpop.permute.xlu1 %1361  ;;  %v210_v3 = vmul.f32 %v3143_v13, %v190_v2 }
0x1084   :  { %2779 = vmatpush3.bf16.msra.mxu1 %v3185_v42  ;;  %v1364_v10 = vsel %vm239_vm3, %v1358_v0, %v1362_v1 }
0x1085   :  { %2780 = vmatprep.subr.bf16.mxu1 %v3020_v4  ;;  %2570 = vmatmul.mubr.msk.f32.vlgmr.msra.gmra.mrb[12].mxu0 %vm349_vm4, %v1364_v10 }
0x1086   :  { %2788 = vmatpush3.bf16.msra.mxu0 %v3112_v5  ;;  %2610 = vmatprep.mubr.msk.f32.mxu0 %vm3021_vm0, %v3022_v7  ;;  %v224_v5 = vadd.f32 %v3149_v16, %v210_v3 }
0x1087   :  { %2789 = vmatprep.subr.bf16.mxu0 %v3020_v4 }
0x1088   :  { %2782 = vmatpush3.bf16.msra.mxu1 %v3203_v47 }
0x1089   :  { %2783 = vmatprep.subr.bf16.mxu1 %v3020_v4 }
0x108a   :  { %2791 = vmatpush3.bf16.msra.mxu0 %v3125_v9 }
0x108b   :  { %2792 = vmatprep.subr.bf16.mxu0 %v3020_v4 }
0x108c   :  { %2785 = vmatpush3.bf16.msra.mxu1 %v3215_v51 }
0x1152   :  { %v1530_v6 = vpop.f32.mrb[12].mxu1 }
0x1153   :  { %v1534_v11 = vadd.f32 %v1530_v6, %v224_v5  ;;  %v2582_v14 = vpop.f32.mrb[13].mxu1 }
0x1155   :  { %2953 = vtanh.f32 %v1534_v11  ;;  %v2205_v20 = vmul.f32 -1.442695, %v1534_v11 }
0x1158   :  { %v1434_v15 = vpop.f32.mrb[12].mxu0 }
0x1159   :  { %v1435_v17 = vadd.f32 %v3254_v63, %v1434_v15  ;;  %v2571_v18 = vpop.f32.mrb[13].mxu0 }
0x115b   :  { %2955 = vtanh.f32 %v1435_v17  ;;  %v2203_v13 = vmul.f32 -1.442695, %v1435_v17 }
0x115c   :  { %2957 = vpow2.f32 %v2205_v20 }
0x115d   :  { %2959 = vpow2.f32 %v2203_v13 }
0x115f   :  { %v2954_v19 = vpop.eup %2953 }
0x1160   :  { %1544 = vrot.lane.b32.xlu0 %v2954_v19, %s3023_s26 }
0x1165   :  { %v2956_v9 = vpop.eup %2955 }
0x1166   :  { %1447 = vrot.lane.b32.xlu1 %v2956_v9, %s3023_s26  ;;  %v2958_v16 = vpop.eup %2957 }
0x1167   :  { %v1538_v21 = vadd.f32 1.0, %v2958_v16  ;;  %v2960_v23 = vpop.eup %2959 }
0x1168   :  { %v1441_v24 = vadd.f32 1.0, %v2960_v23 }
0x1169   :  { %2961 = vrcp.f32 %v1538_v21 }
0x116a   :  { %2963 = vrcp.f32 %v1441_v24 }
0x1173   :  { %v2962_v25 = vpop.eup %2961 }
0x1174   :  { %v2964_v28 = vpop.eup %2963  ;;  %v1542_v32 = vmul.f32 %v2962_v25, %v3433_v49 }
0x1175   :  { %v1445_v36 = vmul.f32 %v2964_v28, %v3437_v53 }
0x11d2   :  { %v1545_v26 = vpop.permute.xlu0 %1544 }
0x11d3   :  { %v1547_v27 = vmul.f32 %v2962_v25, %v1545_v26 }
0x11d5   :  { %1549 = vrot.lane.b32.xlu0 %v1547_v27, %s3023_s26 }
0x11d8   :  { %v1448_v29 = vpop.permute.xlu1 %1447 }
0x11d9   :  { %v1450_v31 = vmul.f32 %v2964_v28, %v1448_v29 }
0x11db   :  { %1452 = vrot.lane.b32.xlu1 %v1450_v31, %s3023_s26 }
0x1247   :  { %v1550_v33 = vpop.permute.xlu0 %1549 }
0x1248   :  { %v3475_v35 = vadd.f32 %v1550_v33, %v1542_v32  ;;  %v2001_v32 = vld [vmem:[%s3716_s12] sm:$0xff]  ;;  %v2002_v33 = vld [vmem:[%s3716_s12 + $0x8] sm:$0xff] }
0x124a   :  { %2965 = vtanh.f32 %v3475_v35 }
0x124d   :  { %v1453_v37 = vpop.permute.xlu1 %1452 }
0x124e   :  { %v3479_v30 = vadd.f32 %v1453_v37, %v1445_v36 }
0x1250   :  { %2967 = vtanh.f32 %v3479_v30 }
0x1254   :  { %v2966_v39 = vpop.eup %2965 }
0x1255   :  { %1555 = vrot.lane.b32.xlu0 %v2966_v39, %s3023_s26  ;;  %v2004_v39 = vld [vmem:[%s3716_s12 + $0x18] sm:$0xff] }
0x125a   :  { %v2968_v40 = vpop.eup %2967 }
0x125b   :  { %1458 = vrot.lane.b32.xlu1 %v2968_v40, %s3023_s26 }
0x12c7   :  { %v1556_v44 = vpop.permute.xlu0 %1555 }
0x12c8   :  { %v1558_v45 = vmul.f32 %v2962_v25, %v1556_v44  ;;  %v2175_v44 = vld [vmem:[%s3714_s10] ss:$0 sm:$0xff]  ;;  %s2167_s10 = sshll.u32 %s3026_s19, 4  ;;  %s2168_s10 = int_to_ptr.vmem [resolvable:$true] %s2167_s10 }
0x12c9   :  { %p3001_p1 = scmp.lt.s32.totalorder %s2168_s10, %s2168_s10 }
0x12ca   :  { %1560 = vrot.lane.b32.xlu1 %v1558_v45, %s3024_s1  ;;  %v136_v45 = vadd.f32 %v2175_v44, %v3228_v56  ;;  %v1900_v44 = vld [vmem:[%s3711_s7 + $0x60] sm:$0xff] }
0x12cd   :  { %v1459_v49 = vpop.permute.xlu1 %1458 }
0x12ce   :  { %196 = vbcast.lane.b32.xlu1 %v194_v48, 256  ;;  %v1461_v50 = vmul.f32 %v2964_v28, %v1459_v49 }
0x12d0   :  { %1564 = vrot.lane.b32.xlu0 %v1461_v50, %s3025_s6 }
0x133c   :  { %v1561_v52 = vpop.permute.xlu1 %1560 }
0x133d   :  { %2611 = vmatmul.mubr.msk.f32.vlgmr.msra.gmra.mrb[14].mxu0 %vm239_vm3, %v1561_v52 }
0x133e   :  { %2794 = vmatpush3.bf16.msra.mxu0 %v3175_v38  ;;  %2629 = vmatprep.mubr.msk.f32.mxu0 %vm3021_vm0, %v3022_v7 }
0x133f   :  { %2795 = vmatprep.subr.bf16.mxu0 %v3020_v4 }
0x1340   :  { %v197_v38 = vpop.permute.xlu1 %196 }
0x1342   :  { %2797 = vmatpush3.bf16.msra.mxu0 %v3185_v42  ;;  %v3496_v8 = vpop.permute.xlu0 %1564  ;;  %v2994_v42 = vld [vmem:[%s3706_s2] ss:$0 sm:$0xff] }
0x1343   :  { %2798 = vmatprep.subr.bf16.mxu0 %v3020_v4  ;;  %v1567_v53 = vsel %vm239_vm3, %v1561_v52, %v3496_v8  ;;  %v211_v54 = vmul.f32 %v2994_v42, %v197_v38 }
0x1344   :  { %2600 = vmatmul.mubr.msk.f32.vlgmr.msra.gmra.mrb[14].mxu1 %vm349_vm4, %v1567_v53 }
0x1345   :  { %v225_v57 = vadd.f32 %v2995_v55, %v211_v54 }
0x1346   :  { %2800 = vmatpush3.bf16.msra.mxu0 %v3203_v47 }
0x1347   :  { %2801 = vmatprep.subr.bf16.mxu0 %v3020_v4 }
0x134a   :  { %2803 = vmatpush3.bf16.msra.mxu0 %v3215_v51 }
0x134b   :  { %2836 = vmatprep.subr.bf16.mxu0 %v3020_v4 }
0x1410   :  { %v1733_v58 = vpop.f32.mrb[14].mxu0 }
0x1411   :  { %v1737_v59 = vadd.f32 %v1733_v58, %v225_v57  ;;  %v2612_v47 = vpop.f32.mrb[15].mxu0 }
0x1412   :  { %v1904_v47 = vld [vmem:[%s3711_s7 + $0x80] sm:$0xff] }
0x1413   :  { %2969 = vtanh.f32 %v1737_v59  ;;  %v2209_v10 = vmul.f32 -1.442695, %v1737_v59 }
0x1417   :  { %v1637_v60 = vpop.f32.mrb[14].mxu1 }
0x1418   :  { %v1638_v51 = vadd.f32 %v3254_v63, %v1637_v60  ;;  %v2601_v61 = vpop.f32.mrb[15].mxu1  ;;  %v1905_v60 = vld [vmem:[%s3711_s7 + $0x88] sm:$0xff] }
0x1419   :  { %v1906_v61 = vld [vmem:[%s3711_s7 + $0x90] sm:$0xff] }
0x141a   :  { %2971 = vtanh.f32 %v1638_v51  ;;  %v2207_v2 = vmul.f32 -1.442695, %v1638_v51  ;;  %v1888_v51 = vld [vmem:[%s3711_s7] sm:$0xff] }
0x141b   :  { %2973 = vpow2.f32 %v2209_v10 }
0x141c   :  { %2975 = vpow2.f32 %v2207_v2  ;;  %v1890_v2 = vld [vmem:[%s3711_s7 + $0x10] sm:$0xff] }
0x141d   :  { %v2970_v0 = vpop.eup %2969 }
0x141e   :  { %1747 = vrot.lane.b32.xlu1 %v2970_v0, %s3023_s26  ;;  %v1907_v0 = vld [vmem:[%s3711_s7 + $0x98] sm:$0xff] }
0x141f   :  { %v2808_v10 = vpack.c.bf16 %v1907_v0, %v1906_v61 }
0x1424   :  { %v2972_v1 = vpop.eup %2971 }
0x1425   :  { %1650 = vrot.lane.b32.xlu0 %v2972_v1, %s3023_s26  ;;  %v2974_v3 = vpop.eup %2973 }
0x1426   :  { %v1741_v5 = vadd.f32 1.0, %v2974_v3  ;;  %v2976_v6 = vpop.eup %2975  ;;  %v1891_v3 = vld [vmem:[%s3711_s7 + $0x18] sm:$0xff] }
0x1427   :  { %v1644_v11 = vadd.f32 1.0, %v2976_v6  ;;  %v1909_v6 = vld [vmem:[%s3711_s7 + $0xa8] sm:$0xff] }
0x1428   :  { %2977 = vrcp.f32 %v1741_v5  ;;  %v1908_v5 = vld [vmem:[%s3711_s7 + $0xa0] sm:$0xff] }
0x1429   :  { %2979 = vrcp.f32 %v1644_v11  ;;  %v2810_v11 = vpack.c.bf16 %v1891_v3, %v1890_v2 }
0x1432   :  { %v2978_v14 = vpop.eup %2977 }
0x1433   :  { %v2980_v18 = vpop.eup %2979  ;;  %v1745_v20 = vmul.f32 %v2978_v14, %v3475_v35  ;;  %v2837_v35 = vpack.c.bf16 %v2002_v33, %v2001_v32  ;;  %v1915_v32 = vld [vmem:[%s3711_s7 + $0xd8] sm:$0xff] }
0x1434   :  { %v1648_v21 = vmul.f32 %v2980_v18, %v3479_v30  ;;  %v2003_v30 = vld [vmem:[%s3716_s12 + $0x10] sm:$0xff] }
0x1435   :  { %v2840_v43 = vpack.c.bf16 %v2004_v39, %v2003_v30  ;;  %v1916_v30 = vld [vmem:[%s3711_s7 + $0xe0] sm:$0xff]  ;;  %v1917_v39 = vld [vmem:[%s3711_s7 + $0xe8] sm:$0xff] }
0x1490   :  { %v1748_v15 = vpop.permute.xlu1 %1747 }
0x1491   :  { %v1750_v17 = vmul.f32 %v2978_v14, %v1748_v15  ;;  %v1892_v15 = vld [vmem:[%s3711_s7 + $0x20] sm:$0xff] }
0x1493   :  { %1752 = vrot.lane.b32.xlu1 %v1750_v17, %s3023_s26  ;;  %v1893_v17 = vld [vmem:[%s3711_s7 + $0x28] sm:$0xff] }
0x1497   :  { %v1651_v19 = vpop.permute.xlu0 %1650 }
0x1498   :  { %v1653_v9 = vmul.f32 %v2980_v18, %v1651_v19  ;;  %v1911_v19 = vld [vmem:[%s3711_s7 + $0xb8] sm:$0xff] }
0x149a   :  { %1655 = vrot.lane.b32.xlu0 %v1653_v9, %s3023_s26 }
0x1505   :  { %v1753_v13 = vpop.permute.xlu1 %1752 }
0x1506   :  { %v1755_v16 = vadd.f32 %v1753_v13, %v1745_v20  ;;  %v2814_v20 = vpack.c.bf16 %v1893_v17, %v1892_v15 }
0x1508   :  { %2981 = vtanh.f32 %v1755_v16  ;;  %v1894_v16 = vld [vmem:[%s3711_s7 + $0x30] sm:$0xff] }
0x150c   :  { %v1656_v23 = vpop.permute.xlu0 %1655 }
0x150d   :  { %v1658_v24 = vadd.f32 %v1656_v23, %v1648_v21  ;;  %v1895_v21 = vld [vmem:[%s3711_s7 + $0x38] sm:$0xff]  ;;  %v1912_v23 = vld [vmem:[%s3711_s7 + $0xc0] sm:$0xff] }
0x150f   :  { %2983 = vtanh.f32 %v1658_v24 }
0x1512   :  { %v2982_v25 = vpop.eup %2981 }
0x1513   :  { %1758 = vrot.lane.b32.xlu1 %v2982_v25, %s3023_s26  ;;  %v2818_v25 = vpack.c.bf16 %v1895_v21, %v1894_v16 }
0x1519   :  { %v2984_v26 = vpop.eup %2983 }
0x151a   :  { %1661 = vrot.lane.b32.xlu0 %v2984_v26, %s3023_s26 }
0x1585   :  { %v1759_v27 = vpop.permute.xlu1 %1758 }
0x1586   :  { %v1761_v28 = vmul.f32 %v2978_v14, %v1759_v27  ;;  %v2812_v14 = vpack.c.bf16 %v1909_v6, %v1908_v5  ;;  %v1896_v27 = vld [vmem:[%s3711_s7 + $0x40] sm:$0xff] }
0x1588   :  { %1763 = vrot.lane.b32.xlu0 %v1761_v28, %s3024_s1  ;;  %v1897_v28 = vld [vmem:[%s3711_s7 + $0x48] sm:$0xff] }
0x1589   :  { %v2822_v33 = vpack.c.bf16 %v1897_v28, %v1896_v27 }
0x158c   :  { %v1662_v29 = vpop.permute.xlu0 %1661 }
0x158d   :  { %v3522_v31 = vmul.f32 %v2980_v18, %v1662_v29  ;;  %v1910_v18 = vld [vmem:[%s3711_s7 + $0xb0] sm:$0xff] }
0x158e   :  { %v2816_v13 = vpack.c.bf16 %v1911_v19, %v1910_v18  ;;  %v1914_v29 = vld [vmem:[%s3711_s7 + $0xd0] sm:$0xff] }
0x158f   :  { %1767 = vrot.lane.b32.xlu1 %v3522_v31, %s3025_s6 }
0x15fa   :  { %v1764_v36 = vpop.permute.xlu0 %1763 }
0x1601   :  { %v1768_v37 = vpop.permute.xlu1 %1767 }
0x1602   :  { %v1770_v40 = vsel %vm239_vm3, %v1764_v36, %v1768_v37  ;;  %v1898_v36 = vld [vmem:[%s3711_s7 + $0x50] sm:$0xff]  ;;  %v1899_v37 = vld [vmem:[%s3711_s7 + $0x58] sm:$0xff] }
0x1603   :  { %2630 = vmatmul.mubr.msk.f32.vlgmr.msra.gmra.mrb[16].mxu0 %vm349_vm4, %v1770_v40  ;;  %v2826_v40 = vpack.c.bf16 %v1899_v37, %v1898_v36 }
0x1604   :  { %2838 = vmatpush3.bf16.msra.mxu0 %v2837_v35  ;;  %2640 = vmatprep.mubr.msk.f32.mxu0 %vm3021_vm0, %v3022_v7  ;;  %v2824_v35 = vpack.c.bf16 %v1915_v32, %v1914_v29 }
0x1605   :  { %2839 = vmatprep.subr.bf16.mxu0 %v3020_v4 }
0x1608   :  { %2841 = vmatpush3.bf16.msra.mxu0 %v2840_v43  ;;  %v2828_v43 = vpack.c.bf16 %v1917_v39, %v1916_v30 }
0x1609   :  { %2842 = vmatprep.subr.bf16.mxu0 %v3020_v4 }
0x160b   :  { %2641 = vmatmul.mubr.msk.f32.vlgmr.msra.gmra.mrb[18].mxu0 %vm239_vm3, %v136_v45  ;;  %v1901_v45 = vld [vmem:[%s3711_s7 + $0x68] sm:$0xff] }
0x160c   :  { %2651 = vmatprep.mubr.msk.f32.mxu0 %vm3021_vm0, %v3022_v7 }
0x16d6   :  { %v1840_v46 = vpop.f32.mrb[16].mxu0 }
0x16d7   :  { %v1841_v48 = vadd.f32 %v3254_v63, %v1840_v46  ;;  %v2631_v49 = vpop.f32.mrb[17].mxu0  ;;  %v2855_v63 = vpack.i.bf16 %v3271_v41, %v3445_v62  ;;  %v2804_v41 = vpack.c.bf16 %v1905_v60, %v1904_v47  ;;  %v1889_v62 = vld [vmem:[%s3711_s7 + $0x8] sm:$0xff]  ;;  %v2830_v46 = vpack.c.bf16 %v1901_v45, %v1900_v44 }
0x16d8   :  { %v2806_v1 = vpack.c.bf16 %v1889_v62, %v1888_v51  ;;  %v1919_v49 = vld [vmem:[%s3711_s7 + $0xf8] sm:$0xff] }
0x16d9   :  { %2985 = vtanh.f32 %v1841_v48  ;;  %v2211_v38 = vmul.f32 -1.442695, %v1841_v48  ;;  %2805 = vmatprep.subr.bf16.mxu1 %v2804_v41  ;;  %v1918_v48 = vld [vmem:[%s3711_s7 + $0xf0] sm:$0xff] }
0x16da   :  { %2807 = vmatpush3.bf16.msra.mxu1 %v2806_v1 }
0x16db   :  { %2987 = vpow2.f32 %v2211_v38  ;;  %2809 = vmatprep.subr.bf16.mxu1 %v2808_v10  ;;  %v1903_v38 = vld [vmem:[%s3711_s7 + $0x78] sm:$0xff] }
0x16de   :  { %v3552_v50 = vpop.f32.mrb[18].mxu0  ;;  %2811 = vmatpush3.bf16.msra.mxu1 %v2810_v11  ;;  %v2215_v11 = vld [vmem:[%s3717_s13] ss:$0 sm:$0xff] }
0x16df   :  { %v2642_v52 = vpop.f32.mrb[19].mxu0  ;;  %2813 = vmatprep.subr.bf16.mxu1 %v2812_v14 }
0x16e0   :  { %v2832_v52 = vpack.c.bf16 %v1919_v49, %v1918_v48 }
0x16e2   :  { %2815 = vmatpush3.bf16.msra.mxu1 %v2814_v20 }
0x16e3   :  { %v2986_v53 = vpop.eup %2985  ;;  %2817 = vmatprep.subr.bf16.mxu1 %v2816_v13 }
0x16e4   :  { %1853 = vrot.lane.b32.xlu0 %v2986_v53, %s3023_s26  ;;  %v1902_v53 = vld [vmem:[%s3711_s7 + $0x70] sm:$0xff] }
0x16e5   :  { %v2988_v56 = vpop.eup %2987 }
0x16e6   :  { %v1847_v42 = vadd.f32 1.0, %v2988_v56  ;;  %2819 = vmatpush3.bf16.msra.mxu1 %v2818_v25  ;;  %v2834_v56 = vpack.c.bf16 %v1903_v38, %v1902_v53 }
0x16e8   :  { %2989 = vrcp.f32 %v1847_v42  ;;  %v1997_v42 = vld [vmem:[%s3715_s11] sm:$0xff] }
0x16f2   :  { %v3555_v54 = vpop.eup %2989 }
0x16f3   :  { %v1851_v57 = vmul.f32 %v3555_v54, %v1658_v24  ;;  %v1913_v24 = vld [vmem:[%s3711_s7 + $0xc8] sm:$0xff] }
0x16f4   :  { %v2820_v26 = vpack.c.bf16 %v1913_v24, %v1912_v23 }
0x16f6   :  { %2821 = vmatprep.subr.bf16.mxu1 %v2820_v26 }
0x16f7   :  { %2823 = vmatpush3.bf16.msra.mxu1 %v2822_v33 }
0x16f8   :  { %2825 = vmatprep.subr.bf16.mxu1 %v2824_v35 }
0x16fb   :  { %2827 = vmatpush3.bf16.msra.mxu1 %v2826_v40 }
0x16fc   :  { %2829 = vmatprep.subr.bf16.mxu1 %v2828_v43 }
0x16ff   :  { %2831 = vmatpush3.bf16.msra.mxu1 %v2830_v46 }
0x1700   :  { %2833 = vmatprep.subr.bf16.mxu1 %v2832_v52 }
0x1703   :  { %2835 = vmatpush3.bf16.msra.mxu1 %v2834_v56 }
0x1756   :  { %v1854_v55 = vpop.permute.xlu0 %1853 }
0x1757   :  { %v1856_v7 = vmul.f32 %v3555_v54, %v1854_v55  ;;  %v1998_v55 = vld [vmem:[%s3715_s11 + $0x8] sm:$0xff] }
0x1759   :  { %1858 = vrot.lane.b32.xlu1 %v1856_v7, %s3023_s26  ;;  %v2843_v7 = vpack.c.bf16 %v1998_v55, %v1997_v42 }
0x175b   :  { %2844 = vmatpush3.bf16.msra.mxu0 %v2843_v7 }
0x175c   :  { %2845 = vmatprep.subr.bf16.mxu0 %v3020_v4 }
0x175d   :  { %2856 = vrot.lane.b32.xlu1 %v2855_v63, %s3024_s1 }
0x17cb   :  { %v1859_v58 = vpop.permute.xlu1 %1858 }
0x17cc   :  { %v1861_v59 = vadd.f32 %v1859_v58, %v1851_v57 }
0x17ce   :  { %2991 = vtanh.f32 %v1861_v59 }
0x17cf   :  { %v2857_v59 = vpop.permute.xlu1 %2856 }
0x17d0   :  { %v2859_v47 = vunpack.i.h.bf16 %v2857_v59  ;;  %v2858_v60 = vunpack.i.l.bf16 %v2857_v59 }
0x17d2   :  { %v1881_v51 = vsel %vm239_vm3, %v2859_v47, %v3321_v34  ;;  %v1885_v41 = vsel %vm239_vm3, %v2858_v60, %v3496_v8  ;;  %v1999_v34 = vld [vmem:[%s3715_s11 + $0x10] sm:$0xff]  ;;  %v2000_v8 = vld [vmem:[%s3715_s11 + $0x18] sm:$0xff] }
0x17d3   :  { %v1886_v4 = vsel %vm349_vm4, %v1885_v41, %v3522_v31  ;;  %v2846_v10 = vpack.c.bf16 %v2000_v8, %v1999_v34  ;;  %v2212_v31 = vld [vmem:[%s3712_s8] ss:$0 sm:$0xff]  ;;  %s2996_s8 = scalar_lea.vmem %s2168_s10, 32 }
0x17d4   :  { %p2997_p0 = scmp.ne.s32.totalorder %s2168_s10, %s2996_s8  ;;  %p3002_p2 = scmp.lt.s32.totalorder %s2996_s8, %s2996_s8 }
0x17d5   :  { %2847 = vmatpush3.bf16.msra.mxu0 %v2846_v10 }
0x17d6   :  { %p3003_p3 = por %p3002_p2, %p3001_p1 }
0x17d8   :  { %v2992_v9 = vpop.eup %2991  ;;  %p3004_p4 = pnand %p3003_p3, %p2997_p0 }
0x17d9   :  { %1864 = vrot.lane.b32.xlu0 %v2992_v9, %s3023_s26 }
0x184b   :  { %v1865_v63 = vpop.permute.xlu0 %1864 }
0x184c   :  { %v1867_v57 = vmul.f32 %v3555_v54, %v1865_v63 }
0x184e   :  { %v2860_v58 = vpack.i.bf16 %v3402_v12, %v1867_v57  ;;  %v1882_v12 = vsel %vm349_vm4, %v1881_v51, %v3359_v22 }
0x1850   :  { %2861 = vrot.lane.b32.xlu0 %v2860_v58, %s3023_s26 }
0x18c2   :  { %v2862_v62 = vpop.permute.xlu0 %2861 }
0x18c3   :  { %v2864_v61 = vunpack.i.h.bf16 %v2862_v62  ;;  %v2863_v0 = vunpack.i.l.bf16 %v2862_v62 }
0x18c5   :  { %v1887_v54 = vsel %vm1883_vm5, %v1886_v4, %v2863_v0  ;;  %v1884_v1 = vsel %vm1883_vm5, %v1882_v12, %v2864_v61 }
0x18c6   :  { %1991 = vmatprep.mubr.f32.mxu1 %v1887_v54 }
0x18c7   :  { %1992 = vmatmul.mubr.f32.vlgmr.msra.gmra.mrb[16].mxu1 %v1884_v1 }
0x199a   :  { %v2366_v2 = vpop.f32.mrb[16].mxu1 }
0x199b   :  { %v2367_v22 = vpop.f32.mrb[17].mxu1 }
0x199c   :  { %v2368_v3 = vadd.f32 %v2367_v22, %v2366_v2 }
0x199e   :  { %v1994_v5 = vadd.f32 %v2368_v3, %v2212_v31 }
0x19a0   :  { %2652 = vmatmul.mubr.msk.f32.vlgmr.msra.gmra.mrb[20].mxu0 %vm239_vm3, %v1994_v5 }
0x1a73   :  { %v2147_v6 = vpop.f32.mrb[20].mxu0 }
0x1a74   :  { %v2148_v14 = vadd.f32 %v2147_v6, %v3552_v50  ;;  %v2653_v15 = vpop.f32.mrb[21].mxu0 }
0x1a76   :  { %v2158_v17 = vadd.f32 %v2215_v11, %v2148_v14 }
0x1a78   :  { %2160 = vst.msk [vmem:[#allocation2] sm:$0x3] %vm2159_vm6, %v2158_v17 }
0x1a79   :  { %3007 = shalt.err (!%p3004_p4)
}
0x1a7a   :  { %s3008_s13 = scalar_lea.hbm %s3718_s14, 32 }
0x1a7b   :  { %p3009_p5 = scmp.ne.s32.totalorder %s3718_s14, %s3008_s13  ;;  %p3012_p6 = scmp.lt.u32.totalorder %s3008_s13, %s3718_s14 }
0x1a7d   :  { %p3014_p7 = pnand %p3012_p6, %p3009_p5 }
0x1a7f   :  { %3017 = shalt.err (!%p3014_p7)
}
0x1a80   :  { %2170 = dma.vmem_to_hbm [thread:$0]  %s2168_s10, 32, %s3718_s14, [#allocation3]  }
0x1a81   :  { %3018 = dma.done.wait [#allocation3], 32  }
0x1a82   :  { %3019 = vsyncadd [#allocation3], 4294967264 }
0x1a83   :  { %2174 = vsyncpa [#allocation3], 1 }

</bundles_post_ra>
